<compile_context>
chip_gen: v5e
topology: v5e:2x2
jax: 0.10.0
libtpu: 0.0.40
codegen_flags: <defaults>
</compile_context>

<pallas_src>
import functools

import numpy as np
import jax
import jax.numpy as jnp
from jax import lax
from jax.experimental import pallas as pl
from jax.experimental.pallas import tpu as pltpu

C8 = 8                 # channels padded to the sublane width
ONES_CH = C8 - 2       # fused "count" channel (constant 1.0 for real pixels)
VALID_CH = C8 - 1      # validity-flag channel of the per-polygon dominant color
LANE = 128


def _round_up(x, m):
    return ((x + m - 1) // m) * m


# --------------------------------------------------------------------------
# Pass 1: per-polygon-block dominant colors via streaming K-means.
#   grid = (P_blocks, S, N_tiles); phases = [stats, lloyd_1 .. lloyd_iters]
#   pix:  (C8, TN)  bf16   channels x pixels (ONES_CH == 1 for real pixels)
#   mask: (PB, TN)  int8   one row per polygon of the block
#   dom:  (PB, C8)  f32    dominant color per polygon (+ validity flag)
# --------------------------------------------------------------------------
def _dominant_color_kernel(pix_ref, mask_ref, dom_ref,
                           s1_ref, s2_ref, cent_ref, csum_ref,
                           *, num_clusters, pb):
    s = pl.program_id(1)
    n = pl.program_id(2)
    num_phases = pl.num_programs(1)
    num_tiles = pl.num_programs(2)
    first_tile = n == 0
    last_tile = n == num_tiles - 1
    nc = num_clusters

    pix = pix_ref[...]                                   # (C8, TN) bf16
    msk = mask_ref[...].astype(jnp.bfloat16)             # (PB, TN) {0,1} bf16

    # ---- phase 0: masked per-channel sum & sum-of-squares (centroid init) --
    @pl.when(s == 0)
    def _stats_phase():
        @pl.when(first_tile)
        def _():
            s1_ref[...] = jnp.zeros_like(s1_ref)
            s2_ref[...] = jnp.zeros_like(s2_ref)

        # contraction over the long (lane) axis; pixel count rides in ONES_CH
        s1_ref[...] += jnp.einsum('pn,cn->pc', msk, pix,
                                  preferred_element_type=jnp.float32)
        s2_ref[...] += jnp.einsum('pn,cn->pc', msk, pix * pix,
                                  preferred_element_type=jnp.float32)

        @pl.when(last_tile)
        def _init_centroids():
            s1 = s1_ref[...]                                     # (PB, C8)
            s2 = s2_ref[...]
            cnt = s1[:, ONES_CH:ONES_CH + 1]                     # (PB, 1)
            safe = jnp.maximum(cnt, 1.0)
            mean = s1 / safe
            var = jnp.maximum(s2 / safe - mean * mean, 0.0)
            std = jnp.sqrt(var + 1e-6)
            cent_rows = []
            for k in range(nc):
                off = k - (nc - 1) / 2.0
                cent_rows.append(mean + off * std)               # (PB, C8)
            cent_ref[...] = jnp.concatenate(cent_rows, axis=0)   # (nc*PB, C8)

    # ---- phases 1..iters: Lloyd accumulation; finalize on the last one ----
    @pl.when(s > 0)
    def _lloyd_phase():
        @pl.when(first_tile)
        def _():
            csum_ref[...] = jnp.zeros_like(csum_ref)

        cent = cent_ref[...]                                     # (nc*PB, C8) f32
        cent_sq = jnp.sum(cent * cent, axis=1, keepdims=True)    # (nc*PB, 1)
        # squared distance minus the (constant in k) |x|^2 term; bf16 on MXU
        d = cent_sq - 2.0 * jnp.einsum('kc,cn->kn',
                                       cent.astype(jnp.bfloat16), pix,
                                       preferred_element_type=jnp.float32)

        inside = msk > 0                                         # (PB, TN) bool
        rows = [d[k * pb:(k + 1) * pb, :] for k in range(nc)]
        a_rows = []
        for k in range(nc):
            a = inside
            for j in range(nc):
                if j == k:
                    continue
                # lowest-index tie-break, fully unrolled (pure VPU)
                a = a & ((rows[k] < rows[j]) if j < k else (rows[k] <= rows[j]))
            a_rows.append(a.astype(jnp.bfloat16))                # (PB, TN)
        assign = jnp.concatenate(a_rows, axis=0)                 # (nc*PB, TN)

        # cluster color sums + member counts in one matmul (counts via ONES_CH)
        csum_ref[...] += jnp.einsum('kn,cn->kc', assign, pix,
                                    preferred_element_type=jnp.float32)

        @pl.when(last_tile)
        def _end_of_pass():
            csum = csum_ref[...]                                 # (nc*PB, C8)
            counts = csum[:, ONES_CH:ONES_CH + 1]                # (nc*PB, 1)
            newc = csum / jnp.maximum(counts, 1.0)
            cent_new = jnp.where(counts > 0.0, newc, cent_ref[...])
            cent_ref[...] = cent_new

            @pl.when(s == num_phases - 1)
            def _finalize():
                cvals = [counts[k * pb:(k + 1) * pb, :] for k in range(nc)]
                cblks = [cent_new[k * pb:(k + 1) * pb, :] for k in range(nc)]
                dom = jnp.zeros((pb, C8), jnp.float32)
                total = jnp.zeros((pb, 1), jnp.float32)
                for k in range(nc):
                    total = total + cvals[k]
                    win = None
                    for j in range(nc):
                        if j == k:
                            continue
                        c = (cvals[k] > cvals[j]) if j < k else (cvals[k] >= cvals[j])
                        win = c if win is None else (win & c)
                    if win is None:                              # nc == 1
                        win = jnp.ones((pb, 1), jnp.bool_)
                    dom = dom + win.astype(jnp.float32) * cblks[k]

                valid = (total > 0.0).astype(jnp.float32)        # (PB, 1)
                lane_iota = lax.broadcasted_iota(jnp.int32, (pb, C8), 1)
                dom = jnp.where(lane_iota == VALID_CH, valid, dom)
                dom_ref[...] = dom                               # (PB, C8)


# --------------------------------------------------------------------------
# Pass 2: paint polygon regions with their dominant colors.
#   grid = (N_tiles, P_blocks); output (C8, TN) bf16 tile resident across the
#   polygon-block sweep. All PB polygons of a block are painted with ONE
#   matmul against a "last valid polygon covering this pixel" one-hot.
# --------------------------------------------------------------------------
def _paint_kernel(dom_ref, mask_ref, out_ref, *, pb):
    b = pl.program_id(1)

    @pl.when(b == 0)
    def _():
        out_ref[...] = jnp.zeros_like(out_ref)

    dom = dom_ref[...]                                    # (PB, C8) f32
    msk = mask_ref[...].astype(jnp.float32)               # (PB, TN) {0,1}
    tn = msk.shape[1]

    # suffix product => one-hot of the LAST valid polygon covering each pixel
    notcov = jnp.ones((1, tn), jnp.float32)
    winner_rows = [None] * pb
    for i in range(pb - 1, -1, -1):
        valid_i = dom[i:i + 1, VALID_CH:VALID_CH + 1]     # (1, 1) in {0,1}
        m_i = msk[i:i + 1, :] * valid_i                   # (1, TN)
        winner_rows[i] = m_i * notcov
        notcov = notcov * (1.0 - m_i)
    winner = jnp.concatenate(winner_rows, axis=0)         # (PB, TN) exact {0,1}

    painted = jnp.einsum('pc,pn->cn', dom.astype(jnp.bfloat16),
                         winner.astype(jnp.bfloat16),
                         preferred_element_type=jnp.float32)   # (C8, TN)
    covered = 1.0 - notcov                                 # (1, TN)
    out_ref[...] = jnp.where(covered > 0.0,
                             painted.astype(out_ref.dtype), out_ref[...])


# --------------------------------------------------------------------------
# Wrapper
# --------------------------------------------------------------------------
def kmeans_shade(image, polygon_masks, num_clusters=3, iters=4,
                 tile_n=16384, poly_block=32):
    """image: (H, W, C) float; polygon_masks: (P, H*W) {0,1}."""
    H, W, C = image.shape
    if C > C8 - 2:
        raise ValueError("need <= 6 color channels (2 sublanes are reserved)")
    if poly_block % 32 != 0:
        raise ValueError("poly_block must be a multiple of 32 (int8 mask tiling)")
    P = polygon_masks.shape[0]
    N = H * W
    nc = num_clusters
    iters = max(1, iters)

    PB = poly_block
    TN = min(_round_up(tile_n, LANE), _round_up(N, LANE))
    N_pad = _round_up(N, TN)
    NT = N_pad // TN
    P_pad = _round_up(P, PB)
    PBLK = P_pad // PB
    S = iters + 1            # stats phase + `iters` Lloyd passes (no count pass)

    # Pixels: channels on sublanes, pixel index lane-dense, bf16 HBM stream.
    pixT = jnp.zeros((C8, N_pad), jnp.float32)
    pixT = pixT.at[:C, :N].set(jnp.asarray(image, jnp.float32).reshape(N, C).T)
    pixT = pixT.at[ONES_CH, :N].set(1.0)                  # fused count channel
    pixT = pixT.astype(jnp.bfloat16)

    # Masks: lane-dense int8 {0,1}, polygon-blocked on the sublane axis.
    masks = jnp.zeros((P_pad, N_pad), jnp.int8)
    masks = masks.at[:P, :N].set(
        (jnp.asarray(polygon_masks).reshape(P, N) > 0).astype(jnp.int8))

    # VMEM budget: in-kernel temporaries (f32 distances, bf16 one-hot, casts)
    # + double-buffered pix/mask/dom blocks, with headroom; floor 32 MiB.
    tmp_bytes = (nc * PB * TN * (4 + 2)        # distances f32 + assign bf16
                 + PB * TN * (2 + 4)           # mask cast bf16 + paint winner f32
                 + C8 * TN * (2 + 2 + 4))      # pix*pix, painted, misc casts
    blk_bytes = 2 * (C8 * TN * 2 + PB * TN * 1 + PB * C8 * 4 + C8 * TN * 2)
    vmem_limit = int(min(96 * 1024 * 1024,
                         max(32 * 1024 * 1024, 2 * (tmp_bytes + blk_bytes))))

    kernel1 = functools.partial(_dominant_color_kernel, num_clusters=nc, pb=PB)
    dom = pl.pallas_call(
        kernel1,
        out_shape=jax.ShapeDtypeStruct((P_pad, C8), jnp.float32),
        grid_spec=pltpu.PrefetchScalarGridSpec(
            num_scalar_prefetch=0,
            grid=(PBLK, S, NT),
            in_specs=[
                pl.BlockSpec((C8, TN), lambda pb, s, n: (0, n)),   # pixel tiles
                pl.BlockSpec((PB, TN), lambda pb, s, n: (pb, n)),  # mask block
            ],
            out_specs=pl.BlockSpec((PB, C8), lambda pb, s, n: (pb, 0)),
            scratch_shapes=[
                pltpu.VMEM((PB, C8), jnp.float32),        # masked sums (+count)
                pltpu.VMEM((PB, C8), jnp.float32),        # masked sums of squares
                pltpu.VMEM((nc * PB, C8), jnp.float32),   # centroids
                pltpu.VMEM((nc * PB, C8), jnp.float32),   # cluster sums + counts
            ],
        ),
        compiler_params=pltpu.CompilerParams(
            dimension_semantics=("parallel", "arbitrary", "arbitrary"),
            vmem_limit_bytes=vmem_limit),
    )(pixT, masks)

    kernel2 = functools.partial(_paint_kernel, pb=PB)
    shaded = pl.pallas_call(
        kernel2,
        out_shape=jax.ShapeDtypeStruct((C8, N_pad), jnp.bfloat16),
        grid_spec=pltpu.PrefetchScalarGridSpec(
            num_scalar_prefetch=0,
            grid=(NT, PBLK),
            in_specs=[
                pl.BlockSpec((PB, C8), lambda n, b: (b, 0)),   # dominant colors
                pl.BlockSpec((PB, TN), lambda n, b: (b, n)),   # mask block
            ],
            out_specs=pl.BlockSpec((C8, TN), lambda n, b: (0, n)),  # resident over b
        ),
        compiler_params=pltpu.CompilerParams(
            dimension_semantics=("parallel", "arbitrary"),
            vmem_limit_bytes=vmem_limit),
    )(dom, masks)

    out = shaded[:C, :N].astype(jnp.float32).T.reshape(H, W, C)
    return out.astype(image.dtype)


if __name__ == "__main__":
    key = jax.random.PRNGKey(0)
    H, W, C = 32, 32, 3

    # deterministic "image" in [0, 255)
    image = jax.random.uniform(key, (H, W, C), jnp.float32, 0.0, 255.0)

    # deterministic polygons (rectangles) rasterized to binary masks in glue.
    # 4 big rects + 28 small rects (two polygon blocks with PB=32), then one
    # last rect painted last, then an empty polygon (skip path). Rows/cols
    # >= 29 are never covered.
    ys, xs = np.mgrid[0:H, 0:W]
    rects = [(0, 0, 14, 14), (0, 14, 14, 28), (14, 0, 28, 14), (10, 10, 24, 24)]
    for i in range(28):
        r0 = (3 * i) % 20
        c0 = (5 * i) % 20
        rects.append((r0, c0, r0 + 6, c0 + 6))
    rects.append((16, 16, 28, 28))      # last non-empty polygon
    rects.append((0, 0, 0, 0))          # empty polygon -> skipped
    masks = np.stack([
        ((ys >= r0) & (ys < r1) & (xs >= c0) & (xs < c1))
        .astype(np.float32).reshape(-1)
        for (r0, c0, r1, c1) in rects
    ])                                  # (P=34, H*W)

    shaded = kmeans_shade(image, jnp.asarray(masks), num_clusters=3, iters=4,
                          tile_n=256)   # small tile to exercise N tiling
    shaded = jax.block_until_ready(shaded)

    assert shaded.shape == (H, W, C)
    assert bool(jnp.all(jnp.isfinite(shaded)))
    # the last non-empty polygon (rows/cols 16..27) was painted last -> one
    # constant color across that region
    region = shaded[16:28, 16:28, :].reshape(-1, C)
    assert bool(jnp.all(region == region[0]))
    # pixels covered by no polygon stay zero
    assert bool(jnp.all(shaded[30, 30, :] == 0.0))
    print("KERNEL_OK")
</pallas_src>

<mosaic_0001>
module attributes {stable_mosaic.version = 11 : i64} {
  func.func @_dominant_color_kernel(%arg0: i32, %arg1: i32, %arg2: i32, %arg3: memref<8x256xbf16, #tpu.memory_space<vmem>>, %arg4: memref<32x256xi8, #tpu.memory_space<vmem>>, %arg5: memref<32x8xf32, #tpu.memory_space<vmem>>, %arg6: memref<32x8xf32, #tpu.memory_space<vmem>>, %arg7: memref<32x8xf32, #tpu.memory_space<vmem>>, %arg8: memref<96x8xf32, #tpu.memory_space<vmem>>, %arg9: memref<96x8xf32, #tpu.memory_space<vmem>>) attributes {dimension_semantics = [#tpu.dimension_semantics<parallel>, #tpu.dimension_semantics<arbitrary>, #tpu.dimension_semantics<arbitrary>], iteration_bounds = array<i64: 2, 5, 4>, scalar_prefetch = 0 : i64, scratch_operands = 4 : i64, tpu.core_type = #tpu.core_type<tc>, window_params = [{transform_indices = @transform_0, window_bounds = array<i64: 8, 256>}, {transform_indices = @transform_1, window_bounds = array<i64: 32, 256>}, {transform_indices = @transform_2, window_bounds = array<i64: 32, 8>}]} {
    %c0_i32 = arith.constant 0 : i32
    %0 = arith.cmpi eq, %arg2, %c0_i32 : i32
    %c3_i32 = arith.constant 3 : i32
    %1 = arith.cmpi eq, %arg2, %c3_i32 : i32
    %c0 = arith.constant 0 : index
    %c0_0 = arith.constant 0 : index
    %2 = vector.load %arg3[%c0, %c0_0] : memref<8x256xbf16, #tpu.memory_space<vmem>>, vector<8x256xbf16>
    %c0_1 = arith.constant 0 : index
    %c0_2 = arith.constant 0 : index
    %3 = vector.load %arg4[%c0_1, %c0_2] : memref<32x256xi8, #tpu.memory_space<vmem>>, vector<32x256xi8>
    %4 = arith.sitofp %3 : vector<32x256xi8> to vector<32x256xbf16>
    %c0_i32_3 = arith.constant 0 : i32
    %5 = arith.cmpi eq, %arg1, %c0_i32_3 : i32
    %6 = arith.extui %5 : i1 to i32
    %c0_i32_4 = arith.constant 0 : i32
    %7 = arith.cmpi ne, %6, %c0_i32_4 : i32
    scf.if %7 {
      %11 = arith.extui %0 : i1 to i32
      %c0_i32_7 = arith.constant 0 : i32
      %12 = arith.cmpi ne, %11, %c0_i32_7 : i32
      scf.if %12 {
        %cst_18 = arith.constant 0.000000e+00 : f32
        %24 = vector.broadcast %cst_18 : f32 to vector<32x8xf32>
        %c0_19 = arith.constant 0 : index
        %c0_20 = arith.constant 0 : index
        %25 = vector.load %arg6[%c0_19, %c0_20] : memref<32x8xf32, #tpu.memory_space<vmem>>, vector<32x8xf32>
        tpu.vector_store %arg6[%c0_19, %c0_20], %24 {strides = array<i32>} : memref<32x8xf32, #tpu.memory_space<vmem>>, vector<32x8xf32>,
        %cst_21 = arith.constant 0.000000e+00 : f32
        %26 = vector.broadcast %cst_21 : f32 to vector<32x8xf32>
        %c0_22 = arith.constant 0 : index
        %c0_23 = arith.constant 0 : index
        %27 = vector.load %arg7[%c0_22, %c0_23] : memref<32x8xf32, #tpu.memory_space<vmem>>, vector<32x8xf32>
        tpu.vector_store %arg7[%c0_22, %c0_23], %26 {strides = array<i32>} : memref<32x8xf32, #tpu.memory_space<vmem>>, vector<32x8xf32>,
      } else {
      }
      %c0_8 = arith.constant 0 : index
      %c0_9 = arith.constant 0 : index
      %13 = vector.load %arg6[%c0_8, %c0_9] : memref<32x8xf32, #tpu.memory_space<vmem>>, vector<32x8xf32>
      "tpu.trace_start"() <{level = 10 : i32, message = "pn,cn->pc"}> : () -> ()
      %cst = arith.constant dense<0.000000e+00> : vector<32x8xf32>
      %14 = tpu.matmul %4, %2, %cst {dimension_numbers = #tpu.dot_dimension_numbers<[1], [1], [0], [0], [0, 0, 1, 0], [], []>} : vector<32x256xbf16>, vector<8x256xbf16>, vector<32x8xf32> -> vector<32x8xf32>
      "tpu.trace_stop"() : () -> ()
      %15 = arith.addf %13, %14 : vector<32x8xf32>
      %c0_10 = arith.constant 0 : index
      %c0_11 = arith.constant 0 : index
      %16 = vector.load %arg6[%c0_10, %c0_11] : memref<32x8xf32, #tpu.memory_space<vmem>>, vector<32x8xf32>
      tpu.vector_store %arg6[%c0_10, %c0_11], %15 {strides = array<i32>} : memref<32x8xf32, #tpu.memory_space<vmem>>, vector<32x8xf32>,
      %c0_12 = arith.constant 0 : index
      %c0_13 = arith.constant 0 : index
      %17 = vector.load %arg7[%c0_12, %c0_13] : memref<32x8xf32, #tpu.memory_space<vmem>>, vector<32x8xf32>
      %18 = arith.mulf %2, %2 : vector<8x256xbf16>
      "tpu.trace_start"() <{level = 10 : i32, message = "pn,cn->pc"}> : () -> ()
      %cst_14 = arith.constant dense<0.000000e+00> : vector<32x8xf32>
      %19 = tpu.matmul %4, %18, %cst_14 {dimension_numbers = #tpu.dot_dimension_numbers<[1], [1], [0], [0], [0, 0, 1, 0], [], []>} : vector<32x256xbf16>, vector<8x256xbf16>, vector<32x8xf32> -> vector<32x8xf32>
      "tpu.trace_stop"() : () -> ()
      %20 = arith.addf %17, %19 : vector<32x8xf32>
      %c0_15 = arith.constant 0 : index
      %c0_16 = arith.constant 0 : index
      %21 = vector.load %arg7[%c0_15, %c0_16] : memref<32x8xf32, #tpu.memory_space<vmem>>, vector<32x8xf32>
      tpu.vector_store %arg7[%c0_15, %c0_16], %20 {strides = array<i32>} : memref<32x8xf32, #tpu.memory_space<vmem>>, vector<32x8xf32>,
      %22 = arith.extui %1 : i1 to i32
      %c0_i32_17 = arith.constant 0 : i32
      %23 = arith.cmpi ne, %22, %c0_i32_17 : i32
      scf.if %23 {
        %c0_18 = arith.constant 0 : index
        %c0_19 = arith.constant 0 : index
        %24 = vector.load %arg6[%c0_18, %c0_19] : memref<32x8xf32, #tpu.memory_space<vmem>>, vector<32x8xf32>
        %c0_20 = arith.constant 0 : index
        %c0_21 = arith.constant 0 : index
        %25 = vector.load %arg7[%c0_20, %c0_21] : memref<32x8xf32, #tpu.memory_space<vmem>>, vector<32x8xf32>
        %26 = vector.extract_strided_slice %24 {offsets = [0, 6], sizes = [32, 1], strides = [1, 1]} : vector<32x8xf32> to vector<32x1xf32>
        %cst_22 = arith.constant 1.000000e+00 : f32
        %27 = vector.broadcast %cst_22 : f32 to vector<32x1xf32>
        %28 = arith.maximumf %26, %27 : vector<32x1xf32>
        %29 = vector.broadcast %28 : vector<32x1xf32> to vector<32x8xf32>
        %30 = arith.divf %24, %29 : vector<32x8xf32>
        %31 = vector.broadcast %28 : vector<32x1xf32> to vector<32x8xf32>
        %32 = arith.divf %25, %31 : vector<32x8xf32>
        %33 = arith.mulf %30, %30 : vector<32x8xf32>
        %34 = arith.subf %32, %33 : vector<32x8xf32>
        %cst_23 = arith.constant 0.000000e+00 : f32
        %35 = vector.broadcast %cst_23 : f32 to vector<32x8xf32>
        %36 = arith.maximumf %34, %35 : vector<32x8xf32>
        %cst_24 = arith.constant 9.99999997E-7 : f32
        %37 = vector.broadcast %cst_24 : f32 to vector<32x8xf32>
        %38 = arith.addf %36, %37 : vector<32x8xf32>
        %39 = math.sqrt %38 : vector<32x8xf32>
        %cst_25 = arith.constant -1.000000e+00 : f32
        %40 = vector.broadcast %cst_25 : f32 to vector<32x8xf32>
        %41 = arith.mulf %40, %39 : vector<32x8xf32>
        %42 = arith.addf %30, %41 : vector<32x8xf32>
        %cst_26 = arith.constant 0.000000e+00 : f32
        %43 = vector.broadcast %cst_26 : f32 to vector<32x8xf32>
        %44 = arith.mulf %43, %39 : vector<32x8xf32>
        %45 = arith.addf %30, %44 : vector<32x8xf32>
        %cst_27 = arith.constant 1.000000e+00 : f32
        %46 = vector.broadcast %cst_27 : f32 to vector<32x8xf32>
        %47 = arith.mulf %46, %39 : vector<32x8xf32>
        %48 = arith.addf %30, %47 : vector<32x8xf32>
        %49 = tpu.concatenate %42, %45, %48 in 0 : vector<32x8xf32>, vector<32x8xf32>, vector<32x8xf32> -> vector<96x8xf32>
        %c0_28 = arith.constant 0 : index
        %c0_29 = arith.constant 0 : index
        %50 = vector.load %arg8[%c0_28, %c0_29] : memref<96x8xf32, #tpu.memory_space<vmem>>, vector<96x8xf32>
        tpu.vector_store %arg8[%c0_28, %c0_29], %49 {strides = array<i32>} : memref<96x8xf32, #tpu.memory_space<vmem>>, vector<96x8xf32>,
      } else {
      }
    } else {
    }
    %c0_i32_5 = arith.constant 0 : i32
    %8 = arith.cmpi sgt, %arg1, %c0_i32_5 : i32
    %9 = arith.extui %8 : i1 to i32
    %c0_i32_6 = arith.constant 0 : i32
    %10 = arith.cmpi ne, %9, %c0_i32_6 : i32
    scf.if %10 {
      %11 = arith.extui %0 : i1 to i32
      %c0_i32_7 = arith.constant 0 : i32
      %12 = arith.cmpi ne, %11, %c0_i32_7 : i32
      scf.if %12 {
        %cst_19 = arith.constant 0.000000e+00 : f32
        %56 = vector.broadcast %cst_19 : f32 to vector<96x8xf32>
        %c0_20 = arith.constant 0 : index
        %c0_21 = arith.constant 0 : index
        %57 = vector.load %arg9[%c0_20, %c0_21] : memref<96x8xf32, #tpu.memory_space<vmem>>, vector<96x8xf32>
        tpu.vector_store %arg9[%c0_20, %c0_21], %56 {strides = array<i32>} : memref<96x8xf32, #tpu.memory_space<vmem>>, vector<96x8xf32>,
      } else {
      }
      %c0_8 = arith.constant 0 : index
      %c0_9 = arith.constant 0 : index
      %13 = vector.load %arg8[%c0_8, %c0_9] : memref<96x8xf32, #tpu.memory_space<vmem>>, vector<96x8xf32>
      %14 = arith.mulf %13, %13 : vector<96x8xf32>
      %cst = arith.constant dense<0.000000e+00> : vector<96xf32>
      %15 = vector.multi_reduction <add>, %14, %cst [1] : vector<96x8xf32> to vector<96xf32>
      %16 = vector.shape_cast %15 : vector<96xf32> to vector<96x1xf32>
      %17 = arith.truncf %13 : vector<96x8xf32> to vector<96x8xbf16>
      "tpu.trace_start"() <{level = 10 : i32, message = "kc,cn->kn"}> : () -> ()
      %cst_10 = arith.constant dense<0.000000e+00> : vector<96x256xf32>
      %18 = tpu.matmul %17, %2, %cst_10 {dimension_numbers = #tpu.dot_dimension_numbers<[1], [0], [0], [1], [0, 0, 1, 1], [], []>} : vector<96x8xbf16>, vector<8x256xbf16>, vector<96x256xf32> -> vector<96x256xf32>
      "tpu.trace_stop"() : () -> ()
      %cst_11 = arith.constant 2.000000e+00 : f32
      %19 = vector.broadcast %cst_11 : f32 to vector<96x256xf32>
      %20 = arith.mulf %19, %18 : vector<96x256xf32>
      %21 = vector.broadcast %16 : vector<96x1xf32> to vector<96x256xf32>
      %22 = arith.subf %21, %20 : vector<96x256xf32>
      %cst_12 = arith.constant 0.000000e+00 : bf16
      %23 = vector.broadcast %cst_12 : bf16 to vector<32x256xbf16>
      %24 = arith.cmpf ogt, %4, %23 : vector<32x256xbf16>
      %25 = vector.extract_strided_slice %22 {offsets = [0, 0], sizes = [32, 256], strides = [1, 1]} : vector<96x256xf32> to vector<32x256xf32>
      %26 = vector.extract_strided_slice %22 {offsets = [32, 0], sizes = [32, 256], strides = [1, 1]} : vector<96x256xf32> to vector<32x256xf32>
      %27 = vector.extract_strided_slice %22 {offsets = [64, 0], sizes = [32, 256], strides = [1, 1]} : vector<96x256xf32> to vector<32x256xf32>
      %28 = arith.cmpf ole, %25, %26 : vector<32x256xf32>
      %29 = arith.andi %24, %28 : vector<32x256xi1>
      %30 = arith.cmpf ole, %25, %27 : vector<32x256xf32>
      %31 = arith.andi %29, %30 : vector<32x256xi1>
      %32 = arith.extui %31 : vector<32x256xi1> to vector<32x256xi32>
      %33 = arith.sitofp %32 : vector<32x256xi32> to vector<32x256xf32>
      %34 = arith.truncf %33 : vector<32x256xf32> to vector<32x256xbf16>
      %35 = arith.cmpf olt, %26, %25 : vector<32x256xf32>
      %36 = arith.andi %24, %35 : vector<32x256xi1>
      %37 = arith.cmpf ole, %26, %27 : vector<32x256xf32>
      %38 = arith.andi %36, %37 : vector<32x256xi1>
      %39 = arith.extui %38 : vector<32x256xi1> to vector<32x256xi32>
      %40 = arith.sitofp %39 : vector<32x256xi32> to vector<32x256xf32>
      %41 = arith.truncf %40 : vector<32x256xf32> to vector<32x256xbf16>
      %42 = arith.cmpf olt, %27, %25 : vector<32x256xf32>
      %43 = arith.andi %24, %42 : vector<32x256xi1>
      %44 = arith.cmpf olt, %27, %26 : vector<32x256xf32>
      %45 = arith.andi %43, %44 : vector<32x256xi1>
      %46 = arith.extui %45 : vector<32x256xi1> to vector<32x256xi32>
      %47 = arith.sitofp %46 : vector<32x256xi32> to vector<32x256xf32>
      %48 = arith.truncf %47 : vector<32x256xf32> to vector<32x256xbf16>
      %49 = tpu.concatenate %34, %41, %48 in 0 : vector<32x256xbf16>, vector<32x256xbf16>, vector<32x256xbf16> -> vector<96x256xbf16>
      %c0_13 = arith.constant 0 : index
      %c0_14 = arith.constant 0 : index
      %50 = vector.load %arg9[%c0_13, %c0_14] : memref<96x8xf32, #tpu.memory_space<vmem>>, vector<96x8xf32>
      "tpu.trace_start"() <{level = 10 : i32, message = "kn,cn->kc"}> : () -> ()
      %cst_15 = arith.constant dense<0.000000e+00> : vector<96x8xf32>
      %51 = tpu.matmul %49, %2, %cst_15 {dimension_numbers = #tpu.dot_dimension_numbers<[1], [1], [0], [0], [0, 0, 1, 0], [], []>} : vector<96x256xbf16>, vector<8x256xbf16>, vector<96x8xf32> -> vector<96x8xf32>
      "tpu.trace_stop"() : () -> ()
      %52 = arith.addf %50, %51 : vector<96x8xf32>
      %c0_16 = arith.constant 0 : index
      %c0_17 = arith.constant 0 : index
      %53 = vector.load %arg9[%c0_16, %c0_17] : memref<96x8xf32, #tpu.memory_space<vmem>>, vector<96x8xf32>
      tpu.vector_store %arg9[%c0_16, %c0_17], %52 {strides = array<i32>} : memref<96x8xf32, #tpu.memory_space<vmem>>, vector<96x8xf32>,
      %54 = arith.extui %1 : i1 to i32
      %c0_i32_18 = arith.constant 0 : i32
      %55 = arith.cmpi ne, %54, %c0_i32_18 : i32
      scf.if %55 {
        %c0_19 = arith.constant 0 : index
        %c0_20 = arith.constant 0 : index
        %56 = vector.load %arg9[%c0_19, %c0_20] : memref<96x8xf32, #tpu.memory_space<vmem>>, vector<96x8xf32>
        %57 = vector.extract_strided_slice %56 {offsets = [0, 6], sizes = [96, 1], strides = [1, 1]} : vector<96x8xf32> to vector<96x1xf32>
        %cst_21 = arith.constant 1.000000e+00 : f32
        %58 = vector.broadcast %cst_21 : f32 to vector<96x1xf32>
        %59 = arith.maximumf %57, %58 : vector<96x1xf32>
        %60 = vector.broadcast %59 : vector<96x1xf32> to vector<96x8xf32>
        %61 = arith.divf %56, %60 : vector<96x8xf32>
        %cst_22 = arith.constant 0.000000e+00 : f32
        %62 = vector.broadcast %cst_22 : f32 to vector<96x1xf32>
        %63 = arith.cmpf ogt, %57, %62 : vector<96x1xf32>
        %c0_23 = arith.constant 0 : index
        %c0_24 = arith.constant 0 : index
        %64 = vector.load %arg8[%c0_23, %c0_24] : memref<96x8xf32, #tpu.memory_space<vmem>>, vector<96x8xf32>
        %65 = vector.shape_cast %63 : vector<96x1xi1> to vector<96x1xi1>
        %66 = vector.broadcast %65 : vector<96x1xi1> to vector<96x8xi1>
        %67 = arith.select %66, %61, %64 : vector<96x8xi1>, vector<96x8xf32>
        %c0_25 = arith.constant 0 : index
        %c0_26 = arith.constant 0 : index
        %68 = vector.load %arg8[%c0_25, %c0_26] : memref<96x8xf32, #tpu.memory_space<vmem>>, vector<96x8xf32>
        tpu.vector_store %arg8[%c0_25, %c0_26], %67 {strides = array<i32>} : memref<96x8xf32, #tpu.memory_space<vmem>>, vector<96x8xf32>,
        %c4_i32 = arith.constant 4 : i32
        %69 = arith.cmpi eq, %arg1, %c4_i32 : i32
        %70 = arith.extui %69 : i1 to i32
        %c0_i32_27 = arith.constant 0 : i32
        %71 = arith.cmpi ne, %70, %c0_i32_27 : i32
        scf.if %71 {
          %72 = vector.extract_strided_slice %57 {offsets = [0, 0], sizes = [32, 1], strides = [1, 1]} : vector<96x1xf32> to vector<32x1xf32>
          %73 = vector.extract_strided_slice %57 {offsets = [32, 0], sizes = [32, 1], strides = [1, 1]} : vector<96x1xf32> to vector<32x1xf32>
          %74 = vector.extract_strided_slice %57 {offsets = [64, 0], sizes = [32, 1], strides = [1, 1]} : vector<96x1xf32> to vector<32x1xf32>
          %75 = vector.extract_strided_slice %67 {offsets = [0, 0], sizes = [32, 8], strides = [1, 1]} : vector<96x8xf32> to vector<32x8xf32>
          %76 = vector.extract_strided_slice %67 {offsets = [32, 0], sizes = [32, 8], strides = [1, 1]} : vector<96x8xf32> to vector<32x8xf32>
          %77 = vector.extract_strided_slice %67 {offsets = [64, 0], sizes = [32, 8], strides = [1, 1]} : vector<96x8xf32> to vector<32x8xf32>
          %cst_28 = arith.constant 0.000000e+00 : f32
          %78 = vector.broadcast %cst_28 : f32 to vector<32x8xf32>
          %cst_29 = arith.constant 0.000000e+00 : f32
          %79 = vector.broadcast %cst_29 : f32 to vector<32x1xf32>
          %80 = arith.addf %79, %72 : vector<32x1xf32>
          %81 = arith.cmpf oge, %72, %73 : vector<32x1xf32>
          %82 = arith.cmpf oge, %72, %74 : vector<32x1xf32>
          %83 = arith.andi %81, %82 : vector<32x1xi1>
          %84 = arith.extui %83 : vector<32x1xi1> to vector<32x1xi32>
          %85 = arith.sitofp %84 : vector<32x1xi32> to vector<32x1xf32>
          %86 = vector.broadcast %85 : vector<32x1xf32> to vector<32x8xf32>
          %87 = arith.mulf %86, %75 : vector<32x8xf32>
          %88 = arith.addf %78, %87 : vector<32x8xf32>
          %89 = arith.addf %80, %73 : vector<32x1xf32>
          %90 = arith.cmpf ogt, %73, %72 : vector<32x1xf32>
          %91 = arith.cmpf oge, %73, %74 : vector<32x1xf32>
          %92 = arith.andi %90, %91 : vector<32x1xi1>
          %93 = arith.extui %92 : vector<32x1xi1> to vector<32x1xi32>
          %94 = arith.sitofp %93 : vector<32x1xi32> to vector<32x1xf32>
          %95 = vector.broadcast %94 : vector<32x1xf32> to vector<32x8xf32>
          %96 = arith.mulf %95, %76 : vector<32x8xf32>
          %97 = arith.addf %88, %96 : vector<32x8xf32>
          %98 = arith.addf %89, %74 : vector<32x1xf32>
          %99 = arith.cmpf ogt, %74, %72 : vector<32x1xf32>
          %100 = arith.cmpf ogt, %74, %73 : vector<32x1xf32>
          %101 = arith.andi %99, %100 : vector<32x1xi1>
          %102 = arith.extui %101 : vector<32x1xi1> to vector<32x1xi32>
          %103 = arith.sitofp %102 : vector<32x1xi32> to vector<32x1xf32>
          %104 = vector.broadcast %103 : vector<32x1xf32> to vector<32x8xf32>
          %105 = arith.mulf %104, %77 : vector<32x8xf32>
          %106 = arith.addf %97, %105 : vector<32x8xf32>
          %cst_30 = arith.constant 0.000000e+00 : f32
          %107 = vector.broadcast %cst_30 : f32 to vector<32x1xf32>
          %108 = arith.cmpf ogt, %98, %107 : vector<32x1xf32>
          %109 = arith.extui %108 : vector<32x1xi1> to vector<32x1xi32>
          %110 = arith.sitofp %109 : vector<32x1xi32> to vector<32x1xf32>
          %111 = tpu.iota {dimensions = array<i32: 1>} : vector<32x8xi32>
          %c7_i32 = arith.constant 7 : i32
          %112 = vector.broadcast %c7_i32 : i32 to vector<32x8xi32>
          %113 = arith.cmpi eq, %111, %112 : vector<32x8xi32>
          %114 = vector.shape_cast %110 : vector<32x1xf32> to vector<32x1xf32>
          %115 = vector.broadcast %114 : vector<32x1xf32> to vector<32x8xf32>
          %116 = arith.select %113, %115, %106 : vector<32x8xi1>, vector<32x8xf32>
          %c0_31 = arith.constant 0 : index
          %c0_32 = arith.constant 0 : index
          %117 = vector.load %arg5[%c0_31, %c0_32] : memref<32x8xf32, #tpu.memory_space<vmem>>, vector<32x8xf32>
          tpu.vector_store %arg5[%c0_31, %c0_32], %116 {strides = array<i32>} : memref<32x8xf32, #tpu.memory_space<vmem>>, vector<32x8xf32>,
        } else {
        }
      } else {
      }
    } else {
    }
    return
  }
  func.func @transform_0(%arg0: i32, %arg1: i32, %arg2: i32) -> (i32, i32) {
    %c0_i32 = arith.constant 0 : i32
    %c0_i32_0 = arith.constant 0 : i32
    return %c0_i32, %arg2 : i32, i32
  }
  func.func @transform_1(%arg0: i32, %arg1: i32, %arg2: i32) -> (i32, i32) {
    %c0_i32 = arith.constant 0 : i32
    return %arg0, %arg2 : i32, i32
  }
  func.func @transform_2(%arg0: i32, %arg1: i32, %arg2: i32) -> (i32, i32) {
    %c0_i32 = arith.constant 0 : i32
    %c0_i32_0 = arith.constant 0 : i32
    return %arg0, %c0_i32 : i32, i32
  }
}

</mosaic_0001>

<bundles_post_ra>
// kernel: tpu_custom_call.1
= control target key start
LH: loop header
LB: loop body
LE: loop exit
PB: predicated region body
PF: predicated region fallthrough
CT: control target
= control target key end

     0   :  { %s3647_s0 = inlined_call_operand.hbm [shape: bf16[8,1024], index: 0, kind: input, shape index: {}]   ;;  %s3648_s1 = inlined_call_operand.hbm [shape: s8[64,1024], index: 1, kind: input, shape index: {}]   ;;  %s3649_s2 = inlined_call_operand.vmem [shape: f32[64,8], index: 2, kind: output, shape index: {}]  }
   0x1   :  { %3663 = sst [smem:[#allocation20_spill]] %s3647_s0 }
   0x2   :  { %7 = vsyncpa [#allocation7], 0 }
   0x3   :  { %9 = vsyncpa [#allocation7 + $0x1], 0 }
   0x4   :  { %10 = vsyncpa [#allocation9], 0 }
   0x5   :  { %12 = vsyncpa [#allocation9 + $0x1], 0  ;;  %s2366_s9 = smov 0   ;;  %s2368_s10 = smov 0  }
   0x6   :  { %s2370_s11 = smov 0   ;;  %s2372_s12 = smov 0  }
   0x7   :  { %s2374_s13 = smov 0   ;;  %s2376_s14 = smov 0  }
   0x8   :  { %s2378_s15 = smov 0   ;;  %s2380_s16 = smov 0  }
   0x9   :  { %s2382_s17 = smov 0   ;;  %s2384_s18 = smov 0  }
   0xa   :  { %s2386_s19 = smov 0   ;;  %s2388_s20 = smov 0  }
   0xb   :  { %s2390_s21 = smov 0  }
   0xc LB: > { %3664 = sst [smem:[#allocation12_spill]] %s2313_s14  ;;  %s1881_s22 = sadd.s32 4294967295, %s2341_s21   ;;  %s2341_s21 = sphi %s2390_s21, %s18_s21   ;;  %s2337_s20 = sphi %s2388_s20, %s3829_s20   ;;  %s2333_s19 = sphi %s2386_s19, %s3819_s19   ;;  %s2329_s18 = sphi %s2384_s18, %s3828_s18   ;;  %s2325_s17 = sphi %s2382_s17, %s3827_s17   ;;  %s2321_s16 = sphi %s2380_s16, %s3817_s16   ;;  %s2317_s15 = sphi %s2378_s15, %s3826_s15   ;;  %s2313_s14 = sphi %s2376_s14, %s3816_s14   ;;  %s2309_s13 = sphi %s2374_s13, %s3825_s13   ;;  %s2305_s12 = sphi %s2372_s12, %s3824_s12   ;;  %s2301_s11 = sphi %s2370_s11, %s3823_s11   ;;  %s2297_s10 = sphi %s2368_s10, %s3822_s10   ;;  %s2293_s9 = sphi %s2366_s9, %s3821_s9  }
   0xd   : > { %3665 = sst [smem:[#allocation13_spill]] %s2317_s15  ;;  %s30_s23 = sadd.s32 1, %s2329_s18 }
   0xe   : > { %3666 = sst [smem:[#allocation14_spill]] %s2321_s16  ;;  %p31_p0 = scmp.ge.s32.totalorder %s30_s23, 4 }
   0xf   : > { %3667 = sst [smem:[#allocation15_spill]] %s2333_s19  ;;  %s33_s24 = sadd.s32 1, %s2333_s19 }
  0x10   : > { %s44_s25 = sadd.s32 1, %s2313_s14  ;;  %p51_p1 = scmp.ne.s32.totalorder %s2313_s14, %s2309_s13 }
  0x11   : > { %s3831_s23 = smov (%p31_p0, %s30_s23), 0  ;;  %s3833_s24 = smov (!%p31_p0, %s33_s24), %s2333_s19 }
  0x12   : > { %3668 = sst [smem:[#allocation16_spill]] %s3831_s23  ;;  %s2442_s26 = ssub.s32 %s2329_s18, %s3831_s23 }
  0x13   : > { %p52_p2 = scmp.eq.s32.totalorder %s2341_s21, 0  ;;  %p42_p3 = scmp.eq.s32.totalorder %s2442_s26, 0 }
  0x14   : > { %p57_p4 = scmp.ne.s32.totalorder %s2309_s13, %s2305_s12  ;;  %p2453_p6 = scmp.eq.s32.totalorder %s1881_s22, 0 }
  0x15   : > { %p2449_p5 = por %p52_p2, %p51_p1  ;;  %p1970_p8 = scmp.lt.s32.totalorder %s2341_s21, 40 }
  0x16   : > { %s2458_s29 = scalar_select %p42_p3, %s2313_s14, %s44_s25  }
  0x17   : > { %p2462_p7 = por %p2453_p6, %p57_p4  ;;  %s135_s3 = sand.u32 1, %s2313_s14  }
  0x18   : > { %3671 = sst [smem:[#allocation17_spill]] %s2458_s29  ;;  %s1885_s4 = sshll.u32 %s135_s3, 3 }
  0x19   : > { %s1958_s5 = sshll.u32 %s2329_s18, 3  ;;  %s3673_s0 = sld [smem:[#allocation20_spill]] }
  0x1a   : > { %s139_s12 = scalar_lea.vmem [#allocation6], %s1885_s4  ;;  %p1964_p9 = pnand %p1970_p8, %p2449_p5 }
  0x1b   : > { %s148_s22 = sshll.u32 %s139_s12, 4  ;;  %p1892_p10 = scmp.ge.s32.totalorder %s2341_s21, 1  ;;  %s149_s22 = int_to_ptr.vmem [resolvable:$true] %s148_s22 }
  0x1c   : > { %p175_p11 = scmp.lt.s32.totalorder %s2341_s21, 41  ;;  %s136_s6 = scalar_lea.sflag [#allocation7], %s135_s3 }
  0x1d   : > { %p35_p13 = scmp.ge.s32.totalorder %s3833_s24, 5  ;;  %s72_s7 = sadd.s32 1, %s2301_s11 }
  0x1e   : > { %p2478_p12 = pnand %p1892_p10, %p175_p11  ;;  %p79_p0 = scmp.ne.s32.totalorder %s2301_s11, %s2297_s10 }
  0x1f   : > { %s144_s8 = scalar_lea.hbm %s3673_s0, %s1958_s5  ;;  %s37_s5 = sadd.s32 1, %s2337_s20 }
  0x20   : > { %s146_s25 = sshll.u32 %s144_s8, 4  ;;  %s3835_s24 = smov (%p35_p13, %s3833_s24), 0  ;;  %s147_s25 = int_to_ptr.hbm [resolvable:$true] %s146_s25 }
  0x21   : > { %1966 = dma.hbm_to_vmem [thread:$0]  (!%p1964_p9), %s147_s25, 128, %s149_s22, %s136_s6  }
  0x22   : > { %3675 = sst [smem:[#allocation18_spill]] %s3835_s24  ;;  %s3837_s5 = smov (!%p35_p13, %s37_s5), %s2337_s20 }
  0x23   : > { %p2493_p1 = por %p79_p0, %p52_p2  ;;  %p85_p3 = scmp.ne.s32.totalorder %s2297_s10, %s2293_s9 }
  0x24   : > { %p39_p4 = scmp.ge.s32.totalorder %s3837_s5, 2  ;;  %s155_s3 = sand.u32 1, %s2301_s11  }
  0x25   : > { %p2502_p5 = por %p85_p3, %p2453_p6  ;;  %s1888_s12 = sshll.u32 %s155_s3, 4 }
  0x26   : > { %s3839_s5 = smov (%p39_p4, %s3837_s5), 0  ;;  %s1889_s22 = sshll.u32 %s2329_s18, 1 }
  0x27   : > { %3678 = sst [smem:[#allocation19_spill]] %s3839_s5  ;;  %s67_s25 = ssub.s32 %s2337_s20, %s3839_s5 }
  0x28   : > { %s69_s6 = sor.u32 %s67_s25, %s2442_s26  ;;  %s1890_s0 = sshll.u32 %s2337_s20, 3 }
  0x29   : > { %p70_p2 = scmp.eq.s32.totalorder %s69_s6, 0  ;;  %s164_s24 = sadd.s32 %s1890_s0, %s1889_s22 }
  0x2a   : > { %s1891_s9 = sshll.u32 %s164_s24, 3  ;;  %s159_s23 = scalar_lea.vmem [#allocation8], %s1888_s12 }
  0x2b   : > { %s170_s19 = sshll.u32 %s159_s23, 4  ;;  %s166_s15 = scalar_lea.hbm %s3648_s1, %s1891_s9  ;;  %s171_s19 = int_to_ptr.vmem [resolvable:$true] %s170_s19 }
  0x2c   : > { %s2514_s28 = scalar_select %p70_p2, %s2301_s11, %s72_s7  }
  0x2d   : > { %s168_s16 = sshll.u32 %s166_s15, 4  ;;  %p1967_p6 = pnand %p1970_p8, %p2493_p1  ;;  %s169_s16 = int_to_ptr.hbm [resolvable:$true] %s168_s16 }
  0x2e   : > { %s156_s5 = scalar_lea.sflag [#allocation9], %s155_s3  ;;  %179 = sbr.rel (%p2478_p12) target bundleno = 1248 (0x4e0), region = 28 }
  0x2f   : > { %1969 = dma.hbm_to_vmem [thread:$0]  (!%p1967_p6), %s169_s16, 256, %s171_s19, %s156_s5  }
  0x30   : > { %s181_s0 = sand.u32 (!%p2478_p12), 1, %s2309_s13  }
  0x31   : > { %s1893_s23 = sshll.u32 (!%p2478_p12), %s181_s0, 3  ;;  %s182_s24 = scalar_lea.sflag (!%p2478_p12), [#allocation7], %s181_s0 }
  0x32   : > { %s185_s26 = scalar_lea.vmem (!%p2478_p12), [#allocation6], %s1893_s23 }
  0x33   : > { %2284 = dma.done.wait (%p2462_p7), %s182_s24, 128  }
  0x34   : > { %2286 = vsyncadd (%p2462_p7), %s182_s24, 4294967168  ;;  %s191_s14 = sand.u32 1, %s2297_s10  }
  0x35   : > { %s1894_s15 = sshll.u32 %s191_s14, 4  ;;  %s192_s29 = scalar_lea.sflag [#allocation9], %s191_s14 }
  0x36   : > { %s195_s16 = scalar_lea.vmem [#allocation8], %s1894_s15 }
  0x37   : > { %2288 = dma.done.wait (%p2502_p5), %s192_s29, 256  }
  0x38   : > { %2290 = vsyncadd (%p2502_p5), %s192_s29, 4294967040  ;;  %s1895_s19 = sshll.u32 %s2325_s17, 2  ;;  %v2541_v0 = vld [vmem:[%s185_s26] sm:$0xff]  ;;  %v234_v1 = vld [vmem:[%s195_s16] sm:$0xff]  ;;  %s3679_s17 = sld [smem:[#allocation14_spill]] }
  0x39   : > { %p225_p8 = scmp.lt.s32.totalorder %s1895_s19, 7  ;;  %v235_v2 = vld [vmem:[%s195_s16 + $0x8] sm:$0xff]  ;;  %v236_v3 = vunpack.c.0.s8 %v234_v1  ;;  %v238_v5 = vunpack.c.1.s8 %v234_v1  ;;  %v240_v7 = vunpack.c.2.s8 %v234_v1  ;;  %v242_v9 = vunpack.c.3.s8 %v234_v1 }
  0x3a   : > { %v237_v4 = vunpack.c.0.s8 %v235_v2  ;;  %v239_v6 = vunpack.c.1.s8 %v235_v2  ;;  %v241_v8 = vunpack.c.2.s8 %v235_v2  ;;  %v243_v10 = vunpack.c.3.s8 %v235_v2 }
  0x3b   : > { %s3841_s19 = smov (!%p225_p8, %s1895_s19), 7  ;;  %v244_v11 = vcvt.s32.f32 %v236_v3  ;;  %v246_v13 = vcvt.s32.f32 %v238_v5  ;;  %v248_v15 = vcvt.s32.f32 %v240_v7  ;;  %v250_v17 = vcvt.s32.f32 %v242_v9 }
  0x3c   : > { %s1896_s4 = sshll.u32 %s3841_s19, 3  ;;  %v245_v12 = vcvt.s32.f32 %v237_v4  ;;  %v247_v14 = vcvt.s32.f32 %v239_v6  ;;  %v249_v16 = vcvt.s32.f32 %v241_v8  ;;  %v251_v18 = vcvt.s32.f32 %v243_v10 }
  0x3d   : > { %s2539_s30 = scalar_lea.vmem %s3649_s2, %s1896_s4 }
  0x3e   : > { %v2543_v19 = vpack.c.bf16 %v245_v12, %v244_v11  ;;  %v2545_v20 = vpack.c.bf16 %v247_v14, %v246_v13  ;;  %v2547_v21 = vpack.c.bf16 %v249_v16, %v248_v15  ;;  %v2549_v22 = vpack.c.bf16 %v251_v18, %v250_v17  ;;  %p1897_p7 = scmp.ne.s32.totalorder %s3679_s17, 0 }
  0x3f   : > { %s3680_s27 = sld [smem:[#allocation13_spill]] (!%p1897_p7) }
  0x40   : > { %259 = sbr.rel (%p1897_p7) target bundleno = 443 (0x1bb), region = 40 }
  0x45   : > { %p1898_p9 = scmp.ne.s32.totalorder %s3680_s27, 0 }
  0x47   : > { %262 = sbr.rel (%p1898_p9) target bundleno = 85 (0x55), region = 44 }
  0x4c   : > { %vm263_vm0 = vcmask 64512   ;;  %v2343_v23 = vmov 0.0  }
  0x4d   : > { %264 = vst.msk [vmem:[#allocation2] sm:$0xff] %vm263_vm0, %v2343_v23 }
  0x4e   : > { %265 = vst.msk [vmem:[#allocation2 + $0x8] sm:$0xff] %vm263_vm0, %v2343_v23 }
  0x4f   : > { %266 = vst.msk [vmem:[#allocation2 + $0x10] sm:$0xff] %vm263_vm0, %v2343_v23 }
  0x50   : > { %267 = vst.msk [vmem:[#allocation2 + $0x18] sm:$0xff] %vm263_vm0, %v2343_v23 }
  0x51   : > { %268 = vst.msk [vmem:[#allocation3] sm:$0xff] %vm263_vm0, %v2343_v23 }
  0x52   : > { %269 = vst.msk [vmem:[#allocation3 + $0x8] sm:$0xff] %vm263_vm0, %v2343_v23 }
  0x53   : > { %270 = vst.msk [vmem:[#allocation3 + $0x10] sm:$0xff] %vm263_vm0, %v2343_v23 }
  0x54   : > { %271 = vst.msk [vmem:[#allocation3 + $0x18] sm:$0xff] %vm263_vm0, %v2343_v23 }
  0x55 PF: > { %v297_v24 = vunpack.c.l.b16 %v2541_v0  ;;  %v298_v25 = vunpack.c.h.b16 %v2541_v0  ;;  %v354_v26 = vunpack.c.l.bf16 %v2541_v0  ;;  %v355_v27 = vunpack.c.h.bf16 %v2541_v0  ;;  %v272_v47 = vld [vmem:[#allocation2] sm:$0xff]  ;;  %v273_v52 = vld [vmem:[#allocation2 + $0x8] sm:$0xff]  ;;  %s3681_s3 = sld [smem:[#allocation13_spill]] }
  0x56   : > { %v280_v32 = vunpack.c.l.b16 %v2543_v19  ;;  %v282_v33 = vunpack.c.l.b16 %v2545_v20  ;;  %v281_v34 = vunpack.c.h.b16 %v2543_v19  ;;  %v283_v35 = vunpack.c.h.b16 %v2545_v20  ;;  %v274_v62 = vld [vmem:[#allocation2 + $0x10] sm:$0xff] }
  0x57   : > { %v299_v28 = vpack.c.b16 %v297_v24, %v297_v24  ;;  %v300_v29 = vpack.c.b16 %v298_v25, %v298_v25  ;;  %v356_v30 = vmul.f32 %v354_v26, %v354_v26  ;;  %v357_v31 = vmul.f32 %v355_v27, %v355_v27  ;;  %v275_v9 = vld [vmem:[#allocation2 + $0x18] sm:$0xff] }
  0x58   : > { %v288_v38 = vpack.c.b16 %v282_v33, %v280_v32  ;;  %v289_v39 = vpack.c.b16 %v283_v35, %v281_v34  ;;  %v284_v40 = vunpack.c.l.b16 %v2547_v21  ;;  %v286_v41 = vunpack.c.l.b16 %v2549_v22  ;;  %v350_v56 = vld [vmem:[#allocation3] sm:$0xff] }
  0x59   : > { %310 = vmatpush.bf16.xpose.msra.mxu0 %v299_v28  ;;  %329 = vmatpush.bf16.xpose.msra.mxu1 %v300_v29  ;;  %v358_v36 = vpack.c.bf16 %v356_v30, %v356_v30  ;;  %v359_v37 = vpack.c.bf16 %v357_v31, %v357_v31  ;;  %v285_v42 = vunpack.c.h.b16 %v2547_v21  ;;  %v287_v43 = vunpack.c.h.b16 %v2549_v22  ;;  %v351_v3 = vld [vmem:[#allocation3 + $0x8] sm:$0xff] }
  0x5a   : > { %v290_v44 = vpack.c.b16 %v286_v41, %v284_v40  ;;  %vm345_vm1 = vcmask 64512   ;;  %v352_v13 = vld [vmem:[#allocation3 + $0x10] sm:$0xff] }
  0x5b   : > { %367 = vmatpush.bf16.xpose.msra.mxu2 %v358_v36  ;;  %386 = vmatpush.bf16.xpose.msra.mxu3 %v359_v37  ;;  %v291_v45 = vpack.c.b16 %v287_v43, %v285_v42  ;;  %v353_v23 = vld [vmem:[#allocation3 + $0x18] sm:$0xff]  ;;  %p1899_p10 = scmp.ne.s32.totalorder %s3681_s3, 3 }
  0x60   : > { %311 = vmatmul.bf16.vlgmr.msra.gmra.mxu0 %v288_v38  ;;  %330 = vmatmul.bf16.vlgmr.msra.gmra.mxu1 %v289_v39 }
  0x62   : > { %368 = vmatmul.bf16.vlgmr.msra.gmra.mxu2 %v288_v38  ;;  %387 = vmatmul.bf16.vlgmr.msra.gmra.mxu3 %v289_v39 }
  0x70   : > { %316 = vmatmul.bf16.gmra.mxu0 %v290_v44  ;;  %335 = vmatmul.bf16.gmra.mxu1 %v291_v45 }
  0x72   : > { %373 = vmatmul.bf16.gmra.mxu2 %v290_v44  ;;  %392 = vmatmul.bf16.gmra.mxu3 %v291_v45 }
  0xdd   : > { %v312_v46 = vpop.f32.mrf.mxu0  ;;  %v331_v48 = vpop.f32.mrf.mxu1 }
  0xde   : > { %v332_v49 = vadd.f32 %v331_v48, %v312_v46 }
  0xe0   : > { %v341_v50 = vadd.f32 %v332_v49, %v272_v47 }
  0xe2   : > { %346 = vst.msk [vmem:[#allocation2] sm:$0xff] %vm345_vm1, %v341_v50 }
  0xe5   : > { %v314_v51 = vpop.f32.mrf.mxu0  ;;  %v333_v53 = vpop.f32.mrf.mxu1 }
  0xe6   : > { %v334_v54 = vadd.f32 %v333_v53, %v314_v51  ;;  %v369_v55 = vpop.f32.mrf.mxu2  ;;  %v388_v57 = vpop.f32.mrf.mxu3 }
  0xe7   : > { %v389_v58 = vadd.f32 %v388_v57, %v369_v55 }
  0xe8   : > { %v342_v59 = vadd.f32 %v334_v54, %v273_v52 }
  0xe9   : > { %v398_v60 = vadd.f32 %v389_v58, %v350_v56 }
  0xea   : > { %347 = vst.msk [vmem:[#allocation2 + $0x8] sm:$0xff] %vm345_vm1, %v342_v59 }
  0xeb   : > { %402 = vst.msk [vmem:[#allocation3] sm:$0xff] %vm345_vm1, %v398_v60 }
  0xed   : > { %v317_v61 = vpop.f32.mrf.mxu0  ;;  %v336_v63 = vpop.f32.mrf.mxu1 }
  0xee   : > { %v337_v1 = vadd.f32 %v336_v63, %v317_v61  ;;  %v371_v2 = vpop.f32.mrf.mxu2  ;;  %v390_v4 = vpop.f32.mrf.mxu3 }
  0xef   : > { %v391_v5 = vadd.f32 %v390_v4, %v371_v2 }
  0xf0   : > { %v343_v6 = vadd.f32 %v337_v1, %v274_v62 }
  0xf1   : > { %v399_v7 = vadd.f32 %v391_v5, %v351_v3 }
  0xf2   : > { %348 = vst.msk [vmem:[#allocation2 + $0x10] sm:$0xff] %vm345_vm1, %v343_v6 }
  0xf3   : > { %403 = vst.msk [vmem:[#allocation3 + $0x8] sm:$0xff] %vm345_vm1, %v399_v7 }
  0xf5   : > { %v319_v8 = vpop.f32.mrf.mxu0  ;;  %v338_v10 = vpop.f32.mrf.mxu1 }
  0xf6   : > { %v339_v11 = vadd.f32 %v338_v10, %v319_v8  ;;  %v374_v12 = vpop.f32.mrf.mxu2  ;;  %v393_v14 = vpop.f32.mrf.mxu3 }
  0xf7   : > { %v394_v15 = vadd.f32 %v393_v14, %v374_v12 }
  0xf8   : > { %v344_v16 = vadd.f32 %v339_v11, %v275_v9 }
  0xf9   : > { %v400_v17 = vadd.f32 %v394_v15, %v352_v13 }
  0xfa   : > { %349 = vst.msk [vmem:[#allocation2 + $0x18] sm:$0xff] %vm345_vm1, %v344_v16 }
  0xfb   : > { %404 = vst.msk [vmem:[#allocation3 + $0x10] sm:$0xff] %vm345_vm1, %v400_v17 }
  0xfe   : > { %v376_v18 = vpop.f32.mrf.mxu2  ;;  %v395_v24 = vpop.f32.mrf.mxu3 }
  0xff   : > { %v396_v25 = vadd.f32 %v395_v24, %v376_v18  ;;  %408 = sbr.rel (%p1899_p10) target bundleno = 443 (0x1bb), region = 48 }
 0x101   : > { %v401_v26 = vadd.f32 %v396_v25, %v353_v23 }
 0x103   : > { %405 = vst.msk [vmem:[#allocation3 + $0x18] sm:$0xff] %vm345_vm1, %v401_v26 }
 0x104   : > { %v411_v27 = vld [vmem:[#allocation2 + $0x10] sm:$0xff]  ;;  %v409_v28 = vld [vmem:[#allocation2] sm:$0xff]  ;;  %v2344_v29 = vmov 6   ;;  %v2574_v32 = vld [vmem:[#allocation2 + $0x18] sm:$0xff] }
 0x105   : > { %2084 = vset.pattern.permute.xlu1 %v2344_v29  ;;  %2083 = vset.pattern.permute.xlu0 %v2344_v29  ;;  %v419_v30 = vmax.f32 %v411_v27, 1.0  ;;  %v417_v31 = vmax.f32 %v409_v28, 1.0  ;;  %v2576_v33 = vld [vmem:[#allocation2 + $0x8] sm:$0xff]  ;;  %v420_v34 = vmax.f32 %v2574_v32, 1.0  ;;  %v415_v60 = vld [vmem:[#allocation3 + $0x10] sm:$0xff]  ;;  %v413_v3 = vld [vmem:[#allocation3] sm:$0xff] }
 0x106   : > { %v418_v35 = vmax.f32 %v2576_v33, 1.0 }
 0x107   : > { %433 = vperm.xlu1 %2084, %v419_v30   ;;  %423 = vperm.xlu0 %2083, %v417_v31  }
 0x10f   : > { %438 = vperm.xlu1 %2084, %v420_v34   ;;  %428 = vperm.xlu0 %2083, %v418_v35  }
 0x179   : > { %v434_v36 = vpop.permute.xlu1 %433  ;;  %v424_v37 = vpop.permute.xlu0 %423 }
 0x17a   : > { %2085 = vrcp.f32 %v434_v36  ;;  %v480_v45 = vand.u32 2147483647, %v434_v36  ;;  %v482_v46 = vand.u32 2147483648, %v434_v36  ;;  %v450_v49 = vand.u32 2147483647, %v424_v37 }
 0x17b   : > { %2087 = vrcp.f32 %v424_v37  ;;  %v452_v50 = vand.u32 2147483648, %v424_v37  ;;  %vm476_vm4 = vweird.f32 %v434_v36  ;;  %vm446_vm7 = vweird.f32 %v424_v37 }
 0x17c   : > { %vm481_vm6 = vcmp.eq.f32.partialorder %v480_v45, 8.507059e+37  ;;  %v483_v54 = vor.u32 1.1754944e-38, %v482_v46  ;;  %vm451_vm9 = vcmp.eq.f32.partialorder %v450_v49, 8.507059e+37 }
 0x17d   : > { %v453_v58 = vor.u32 1.1754944e-38, %v452_v50 }
 0x180   : > { %v2086_v38 = vpop.eup %2085 }
 0x181   : > { %v2088_v39 = vpop.eup %2087  ;;  %v472_v40 = vmul.f32 %v2086_v38, %v434_v36  ;;  %v439_v41 = vpop.permute.xlu1 %438  ;;  %vm477_vm2 = vweird.f32 %v2086_v38 }
 0x182   : > { %v2580_v42 = vpop.permute.xlu0 %428  ;;  %v442_v43 = vmul.f32 %v2088_v39, %v424_v37  ;;  %2089 = vrcp.f32 %v439_v41  ;;  %vm447_vm3 = vweird.f32 %v2088_v39  ;;  %vm478_vm5 = vmor %vm476_vm4, %vm477_vm2  ;;  %v495_v63 = vand.u32 2147483647, %v439_v41 }
 0x183   : > { %v473_v44 = vsub.f32 1.0, %v472_v40  ;;  %2091 = vrcp.f32 %v2580_v42  ;;  %vm448_vm8 = vmor %vm446_vm7, %vm447_vm3  ;;  %v497_v6 = vand.u32 2147483648, %v439_v41  ;;  %v465_v9 = vand.u32 2147483647, %v2580_v42 }
 0x184   : > { %v443_v47 = vsub.f32 1.0, %v442_v43  ;;  %v467_v10 = vand.u32 2147483648, %v2580_v42  ;;  %vm491_vm12 = vweird.f32 %v439_v41  ;;  %vm461_vm14 = vweird.f32 %v2580_v42 }
 0x185   : > { %v474_v48 = vmul.f32 %v2086_v38, %v473_v44  ;;  %v498_v24 = vor.u32 1.1754944e-38, %v497_v6  ;;  %vm496_vm15 = vcmp.eq.f32.partialorder %v495_v63, 8.507059e+37  ;;  %vm466_vm2 = vcmp.eq.f32.partialorder %v465_v9, 8.507059e+37 }
 0x186   : > { %v444_v51 = vmul.f32 %v2088_v39, %v443_v47 }
 0x187   : > { %v475_v52 = vadd.f32 %v2086_v38, %v474_v48 }
 0x188   : > { %v2090_v53 = vpop.eup %2089  ;;  %v445_v55 = vadd.f32 %v2088_v39, %v444_v51 }
 0x189   : > { %v2092_v56 = vpop.eup %2091  ;;  %v479_v57 = vsel %vm478_vm5, %v2086_v38, %v475_v52  ;;  %v487_v59 = vmul.f32 %v2090_v53, %v439_v41  ;;  %vm492_vm10 = vweird.f32 %v2090_v53  ;;  %v416_v38 = vld [vmem:[#allocation3 + $0x18] sm:$0xff] }
 0x18a   : > { %v484_v61 = vsel %vm481_vm6, %v483_v54, %v479_v57  ;;  %v449_v62 = vsel %vm448_vm8, %v2088_v39, %v445_v55  ;;  %v457_v1 = vmul.f32 %v2092_v56, %v2580_v42  ;;  %vm462_vm11 = vweird.f32 %v2092_v56  ;;  %vm493_vm13 = vmor %vm491_vm12, %vm492_vm10  ;;  %v414_v39 = vld [vmem:[#allocation3 + $0x8] sm:$0xff] }
 0x18b   : > { %v2584_v2 = vmul.f32 %v484_v61, %v411_v27  ;;  %v454_v4 = vsel %vm451_vm9, %v453_v58, %v449_v62  ;;  %v488_v5 = vsub.f32 1.0, %v487_v59  ;;  %v503_v11 = vmul.f32 %v484_v61, %v415_v60  ;;  %vm463_vm0 = vmor %vm461_vm14, %vm462_vm11 }
 0x18c   : > { %v2586_v7 = vmul.f32 %v454_v4, %v409_v28  ;;  %v458_v8 = vsub.f32 1.0, %v457_v1  ;;  %v501_v14 = vmul.f32 %v454_v4, %v413_v3  ;;  %v468_v28 = vor.u32 1.1754944e-38, %v467_v10 }
 0x18d   : > { %v507_v12 = vmul.f32 %v2584_v2, %v2584_v2  ;;  %v489_v13 = vmul.f32 %v2090_v53, %v488_v5 }
 0x18e   : > { %v505_v15 = vmul.f32 %v2586_v7, %v2586_v7  ;;  %v459_v16 = vmul.f32 %v2092_v56, %v458_v8 }
 0x18f   : > { %v511_v17 = vsub.f32 %v503_v11, %v507_v12  ;;  %v490_v18 = vadd.f32 %v2090_v53, %v489_v13 }
 0x190   : > { %v509_v23 = vsub.f32 %v501_v14, %v505_v15  ;;  %v460_v25 = vadd.f32 %v2092_v56, %v459_v16 }
 0x191   : > { %v515_v26 = vmax.f32 %v511_v17, 0.0  ;;  %v494_v27 = vsel %vm493_vm13, %v2090_v53, %v490_v18 }
 0x192   : > { %v513_v29 = vmax.f32 %v509_v23, 0.0  ;;  %v499_v30 = vsel %vm496_vm15, %v498_v24, %v494_v27  ;;  %v464_v31 = vsel %vm463_vm0, %v2092_v56, %v460_v25 }
 0x193   : > { %v519_v34 = vadd.f32 1e-06, %v515_v26  ;;  %v2596_v35 = vmul.f32 %v499_v30, %v2574_v32  ;;  %v469_v36 = vsel %vm466_vm2, %v468_v28, %v464_v31  ;;  %v504_v41 = vmul.f32 %v499_v30, %v416_v38 }
 0x194   : > { %v517_v37 = vadd.f32 1e-06, %v513_v29  ;;  %v2599_v40 = vmul.f32 %v469_v36, %v2576_v33  ;;  %v502_v43 = vmul.f32 %v469_v36, %v414_v39 }
 0x195   : > { %2093 = vrsqrt.f32 %v519_v34  ;;  %v508_v42 = vmul.f32 %v2596_v35, %v2596_v35  ;;  %vm552_vm3 = vcmp.eq.f32.partialorder %v519_v34, inf  ;;  %vm554_vm4 = vcmp.eq.f32.partialorder %v519_v34, 0.0 }
 0x196   : > { %2095 = vrsqrt.f32 %v517_v37  ;;  %v506_v44 = vmul.f32 %v2599_v40, %v2599_v40  ;;  %v555_v3 = vand.u32 2147483648, %v519_v34  ;;  %vm528_vm5 = vcmp.eq.f32.partialorder %v517_v37, inf }
 0x197   : > { %v512_v45 = vsub.f32 %v504_v41, %v508_v42  ;;  %v531_v8 = vand.u32 2147483648, %v517_v37  ;;  %vm530_vm6 = vcmp.eq.f32.partialorder %v517_v37, 0.0 }
 0x198   : > { %v510_v32 = vsub.f32 %v502_v43, %v506_v44 }
 0x199   : > { %v516_v47 = vmax.f32 %v512_v45, 0.0 }
 0x19a   : > { %v514_v48 = vmax.f32 %v510_v32, 0.0 }
 0x19b   : > { %v2094_v46 = vpop.eup %2093  ;;  %v520_v33 = vadd.f32 1e-06, %v516_v47 }
 0x19c   : > { %v2096_v49 = vpop.eup %2095  ;;  %v546_v50 = vmul.f32 %v2094_v46, %v519_v34  ;;  %v2605_v52 = vadd.f32 1e-06, %v514_v48 }
 0x19d   : > { %v522_v51 = vmul.f32 %v2096_v49, %v517_v37  ;;  %2097 = vrsqrt.f32 %v520_v33  ;;  %vm564_vm7 = vcmp.eq.f32.partialorder %v520_v33, inf  ;;  %vm566_vm8 = vcmp.eq.f32.partialorder %v520_v33, 0.0 }
 0x19e   : > { %v547_v53 = vmul.f32 %v2094_v46, %v546_v50  ;;  %2099 = vrsqrt.f32 %v2605_v52  ;;  %vm540_vm9 = vcmp.eq.f32.partialorder %v2605_v52, inf  ;;  %v543_v39 = vand.u32 2147483648, %v2605_v52 }
 0x19f   : > { %v523_v54 = vmul.f32 %v2096_v49, %v522_v51  ;;  %vm542_vm10 = vcmp.eq.f32.partialorder %v2605_v52, 0.0 }
 0x1a0   : > { %v548_v55 = vmul.f32 0.5, %v547_v53 }
 0x1a1   : > { %v524_v56 = vmul.f32 0.5, %v523_v54 }
 0x1a2   : > { %v549_v57 = vsub.f32 1.5, %v548_v55 }
 0x1a3   : > { %v525_v58 = vsub.f32 1.5, %v524_v56  ;;  %v2098_v60 = vpop.eup %2097 }
 0x1a4   : > { %v550_v59 = vmul.f32 %v2094_v46, %v549_v57  ;;  %v2100_v62 = vpop.eup %2099  ;;  %v558_v1 = vmul.f32 %v2098_v60, %v520_v33 }
 0x1a5   : > { %v526_v61 = vmul.f32 %v2096_v49, %v525_v58  ;;  %v534_v5 = vmul.f32 %v2100_v62, %v2605_v52 }
 0x1a6   : > { %v551_v63 = vmul.f32 %v550_v59, %v519_v34  ;;  %v559_v9 = vmul.f32 %v2098_v60, %v558_v1 }
 0x1a7   : > { %v527_v4 = vmul.f32 %v526_v61, %v517_v37  ;;  %v535_v12 = vmul.f32 %v2100_v62, %v534_v5 }
 0x1a8   : > { %v553_v6 = vsel %vm552_vm3, %v519_v34, %v551_v63  ;;  %v560_v24 = vmul.f32 0.5, %v559_v9 }
 0x1a9   : > { %v556_v10 = vsel %vm554_vm4, %v555_v3, %v553_v6  ;;  %v529_v11 = vsel %vm528_vm5, %v517_v37, %v527_v4  ;;  %v536_v27 = vmul.f32 0.5, %v535_v12  ;;  %v567_v37 = vand.u32 2147483648, %v520_v33 }
 0x1aa   : > { %v571_v13 = vmul.f32 -1.0, %v556_v10  ;;  %v579_v14 = vmul.f32 0.0, %v556_v10  ;;  %v587_v15 = vadd.f32 %v556_v10, %v2584_v2  ;;  %v532_v16 = vsel %vm530_vm6, %v531_v8, %v529_v11 }
 0x1ab   : > { %v569_v17 = vmul.f32 -1.0, %v532_v16  ;;  %v577_v18 = vmul.f32 0.0, %v532_v16  ;;  %v585_v23 = vadd.f32 %v532_v16, %v2586_v7  ;;  %v561_v30 = vsub.f32 1.5, %v560_v24 }
 0x1ac   : > { %v575_v25 = vadd.f32 %v571_v13, %v2584_v2  ;;  %v583_v26 = vadd.f32 %v579_v14, %v2584_v2  ;;  %599 = vst.msk [vmem:[#allocation4 + $0x50] sm:$0xff] %vm345_vm1, %v587_v15  ;;  %v537_v31 = vsub.f32 1.5, %v536_v27 }
 0x1ad   : > { %v573_v28 = vadd.f32 %v569_v17, %v2586_v7  ;;  %v581_v29 = vadd.f32 %v577_v18, %v2586_v7  ;;  %597 = vst.msk [vmem:[#allocation4 + $0x40] sm:$0xff] %vm345_vm1, %v585_v23  ;;  %v562_v34 = vmul.f32 %v2098_v60, %v561_v30 }
 0x1ae   : > { %591 = vst.msk [vmem:[#allocation4 + $0x10] sm:$0xff] %vm345_vm1, %v575_v25  ;;  %v538_v36 = vmul.f32 %v2100_v62, %v537_v31 }
 0x1af   : > { %595 = vst.msk [vmem:[#allocation4 + $0x30] sm:$0xff] %vm345_vm1, %v583_v26  ;;  %v563_v2 = vmul.f32 %v562_v34, %v520_v33 }
 0x1b0   : > { %589 = vst.msk [vmem:[#allocation4] sm:$0xff] %vm345_vm1, %v573_v28  ;;  %v539_v38 = vmul.f32 %v538_v36, %v2605_v52 }
 0x1b1   : > { %593 = vst.msk [vmem:[#allocation4 + $0x20] sm:$0xff] %vm345_vm1, %v581_v29  ;;  %v565_v7 = vsel %vm564_vm7, %v520_v33, %v563_v2 }
 0x1b2   : > { %v568_v41 = vsel %vm566_vm8, %v567_v37, %v565_v7  ;;  %v541_v42 = vsel %vm540_vm9, %v2605_v52, %v539_v38 }
 0x1b3   : > { %v572_v43 = vmul.f32 -1.0, %v568_v41  ;;  %v580_v44 = vmul.f32 0.0, %v568_v41  ;;  %v588_v45 = vadd.f32 %v568_v41, %v2596_v35  ;;  %v544_v32 = vsel %vm542_vm10, %v543_v39, %v541_v42 }
 0x1b4   : > { %v570_v46 = vmul.f32 -1.0, %v544_v32  ;;  %v578_v47 = vmul.f32 0.0, %v544_v32  ;;  %v586_v48 = vadd.f32 %v544_v32, %v2599_v40 }
 0x1b5   : > { %v576_v49 = vadd.f32 %v572_v43, %v2596_v35  ;;  %v584_v50 = vadd.f32 %v580_v44, %v2596_v35  ;;  %600 = vst.msk [vmem:[#allocation4 + $0x58] sm:$0xff] %vm345_vm1, %v588_v45 }
 0x1b6   : > { %v574_v51 = vadd.f32 %v570_v46, %v2599_v40  ;;  %v582_v33 = vadd.f32 %v578_v47, %v2599_v40  ;;  %598 = vst.msk [vmem:[#allocation4 + $0x48] sm:$0xff] %vm345_vm1, %v586_v48 }
 0x1b7   : > { %592 = vst.msk [vmem:[#allocation4 + $0x18] sm:$0xff] %vm345_vm1, %v576_v49 }
 0x1b8   : > { %596 = vst.msk [vmem:[#allocation4 + $0x38] sm:$0xff] %vm345_vm1, %v584_v50 }
 0x1b9   : > { %590 = vst.msk [vmem:[#allocation4 + $0x8] sm:$0xff] %vm345_vm1, %v574_v51 }
 0x1ba   : > { %594 = vst.msk [vmem:[#allocation4 + $0x28] sm:$0xff] %vm345_vm1, %v582_v33 }
 0x1bb PF: > { %s3682_s8 = sld [smem:[#allocation14_spill]] }
 0x1c1   : > { %p1900_p11 = scmp.le.s32.totalorder %s3682_s8, 0 }
 0x1c2   : > { %s3683_s12 = sld [smem:[#allocation13_spill]] (!%p1900_p11) }
 0x1c3   : > { %604 = sbr.rel (%p1900_p11) target bundleno = 1248 (0x4e0), region = 52 }
 0x1c8   : > { %p1901_p12 = scmp.ne.s32.totalorder %s3683_s12, 0 }
 0x1ca   : > { %607 = sbr.rel (%p1901_p12) target bundleno = 476 (0x1dc), region = 56 }
 0x1cf   : > { %vm608_vm11 = vcmask 64512   ;;  %v2345_v35 = vmov 0.0  }
 0x1d0   : > { %609 = vst.msk [vmem:[#allocation5] sm:$0xff] %vm608_vm11, %v2345_v35 }
 0x1d1   : > { %610 = vst.msk [vmem:[#allocation5 + $0x8] sm:$0xff] %vm608_vm11, %v2345_v35 }
 0x1d2   : > { %611 = vst.msk [vmem:[#allocation5 + $0x10] sm:$0xff] %vm608_vm11, %v2345_v35 }
 0x1d3   : > { %612 = vst.msk [vmem:[#allocation5 + $0x18] sm:$0xff] %vm608_vm11, %v2345_v35 }
 0x1d4   : > { %613 = vst.msk [vmem:[#allocation5 + $0x20] sm:$0xff] %vm608_vm11, %v2345_v35 }
 0x1d5   : > { %614 = vst.msk [vmem:[#allocation5 + $0x28] sm:$0xff] %vm608_vm11, %v2345_v35 }
 0x1d6   : > { %615 = vst.msk [vmem:[#allocation5 + $0x30] sm:$0xff] %vm608_vm11, %v2345_v35 }
 0x1d7   : > { %616 = vst.msk [vmem:[#allocation5 + $0x38] sm:$0xff] %vm608_vm11, %v2345_v35 }
 0x1d8   : > { %617 = vst.msk [vmem:[#allocation5 + $0x40] sm:$0xff] %vm608_vm11, %v2345_v35 }
 0x1d9   : > { %618 = vst.msk [vmem:[#allocation5 + $0x48] sm:$0xff] %vm608_vm11, %v2345_v35 }
 0x1da   : > { %619 = vst.msk [vmem:[#allocation5 + $0x50] sm:$0xff] %vm608_vm11, %v2345_v35 }
 0x1db   : > { %620 = vst.msk [vmem:[#allocation5 + $0x58] sm:$0xff] %vm608_vm11, %v2345_v35 }
 0x1dc PF: > { %v689_v40 = vunpack.c.l.b16 %v2541_v0  ;;  %v690_v52 = vunpack.c.h.b16 %v2541_v0  ;;  %v621_v53 = vld [vmem:[#allocation4] sm:$0xff]  ;;  %vm711_vm1 = vcmask 1043456   ;;  %v622_v54 = vld [vmem:[#allocation4 + $0x8] sm:$0xff]  ;;  %vm3654_vm12 = vcmask 64512   ;;  %v623_v11 = vld [vmem:[#allocation4 + $0x10] sm:$0xff]  ;;  %s3767_s22 = sld [smem:[#allocation13_spill]] }
 0x1dd   : > { %v633_v55 = vmul.f32 %v621_v53, %v621_v53  ;;  %v625_v56 = vld [vmem:[#allocation4 + $0x20] sm:$0xff]  ;;  %v682_v63 = vpack.c.bf16 %v622_v54, %v621_v53  ;;  %v626_v3 = vld [vmem:[#allocation4 + $0x28] sm:$0xff]  ;;  %v634_v0 = vmul.f32 %v622_v54, %v622_v54  ;;  %v635_v12 = vmul.f32 %v623_v11, %v623_v11  ;;  %v624_v13 = vld [vmem:[#allocation4 + $0x18] sm:$0xff] }
 0x1de   : > { %v691_v57 = vpack.c.b16 %v689_v40, %v689_v40  ;;  %v692_v58 = vpack.c.b16 %v690_v52, %v690_v52  ;;  %v637_v59 = vmul.f32 %v625_v56, %v625_v56  ;;  %v638_v4 = vmul.f32 %v626_v3, %v626_v3  ;;  %v629_v5 = vld [vmem:[#allocation4 + $0x40] sm:$0xff]  ;;  %v630_v18 = vld [vmem:[#allocation4 + $0x48] sm:$0xff]  ;;  %v627_v25 = vld [vmem:[#allocation4 + $0x30] sm:$0xff] }
 0x1df   : > { %v646_v60 = vsel %vm3654_vm12, %v633_v55, 0.0  ;;  %v649_v6 = vsel %vm3654_vm12, %v634_v0, 0.0  ;;  %v641_v8 = vmul.f32 %v629_v5, %v629_v5  ;;  %v636_v14 = vmul.f32 %v624_v13, %v624_v13  ;;  %v628_v29 = vld [vmem:[#allocation4 + $0x38] sm:$0xff]  ;;  %v631_v36 = vld [vmem:[#allocation4 + $0x50] sm:$0xff] }
 0x1e0   : > { %v713_v61 = vsel %vm711_vm1, %v691_v57, 0  ;;  %v716_v62 = vsel %vm711_vm1, %v692_v58, 0  ;;  %647 = vadd.xlane.f32.xlu0 %v646_v60  ;;  %v658_v1 = vsel %vm3654_vm12, %v637_v59, 0.0  ;;  %1097 = vmatpush.bf16.xpose.msra.mxu2 %v691_v57  ;;  %v661_v9 = vsel %vm3654_vm12, %v638_v4, 0.0  ;;  %v632_v2 = vld [vmem:[#allocation4 + $0x58] sm:$0xff] }
 0x1e1   : > { %725 = vmatpush.bf16.msra.mxu0 %v713_v61  ;;  %764 = vmatpush.bf16.msra.mxu1 %v716_v62  ;;  %v670_v10 = vsel %vm3654_vm12, %v641_v8, 0.0  ;;  %v652_v15 = vsel %vm3654_vm12, %v635_v12, 0.0  ;;  %v655_v16 = vsel %vm3654_vm12, %v636_v14, 0.0  ;;  %v683_v17 = vpack.c.bf16 %v624_v13, %v623_v11 }
 0x1e2   : > { %659 = vadd.xlane.f32.xlu1 %v658_v1  ;;  %1136 = vmatpush.bf16.xpose.msra.mxu3 %v692_v58  ;;  %v642_v23 = vmul.f32 %v630_v18, %v630_v18  ;;  %v639_v26 = vmul.f32 %v627_v25, %v627_v25  ;;  %v684_v28 = vpack.c.bf16 %v626_v3, %v625_v56  ;;  %v844_v0 = vunpack.c.l.bf16 %v2543_v19  ;;  %p1938_p13 = scmp.ne.s32.totalorder %s3767_s22, 3 }
 0x1e3   : > { %671 = vadd.xlane.f32.xlu2 %v670_v10  ;;  %v640_v30 = vmul.f32 %v628_v29, %v628_v29  ;;  %v685_v34 = vpack.c.bf16 %v628_v29, %v627_v25  ;;  %v643_v37 = vmul.f32 %v631_v36, %v631_v36  ;;  %v644_v38 = vmul.f32 %v632_v2, %v632_v2  ;;  %s3809_s25 = sld [smem:[#allocation14_spill]] (!%p1938_p13) }
 0x1e4   : > { %1902 = vmatmul.msk.bf16.vlgmr.msra.gmra.mxu0 %vm3654_vm12, %v682_v63  ;;  %1908 = vmatmul.msk.bf16.vlgmr.msra.gmra.mxu1 %vm3654_vm12, %v682_v63  ;;  %v673_v24 = vsel %vm3654_vm12, %v642_v23, 0.0  ;;  %v664_v27 = vsel %vm3654_vm12, %v639_v26, 0.0  ;;  %v686_v41 = vpack.c.bf16 %v630_v18, %v629_v5  ;;  %v687_v42 = vpack.c.bf16 %v632_v2, %v631_v36 }
 0x1e5   : > { %v667_v31 = vsel %vm3654_vm12, %v640_v30, 0.0  ;;  %v676_v7 = vsel %vm3654_vm12, %v643_v37, 0.0  ;;  %v679_v39 = vsel %vm3654_vm12, %v644_v38, 0.0  ;;  %v846_v11 = vunpack.c.l.bf16 %v2545_v20 }
 0x1e6   : > { %v847_v14 = vunpack.c.h.bf16 %v2545_v20  ;;  %vm2688_vm13 = vcmp.gt.f32.partialorder %v844_v0, 0.0  ;;  %v3686_v23 = vmov 0  ;;  %v3690_v30 = vmov 0 }
 0x1e7   : > { %vm2706_vm2 = vcmp.gt.f32.partialorder %v846_v11, 0.0  ;;  %v848_v37 = vunpack.c.l.bf16 %v2547_v21  ;;  %v3706_v0 = vmov 0 }
 0x1e8   : > { %650 = vadd.xlane.f32.xlu0 %v649_v6  ;;  %v845_v6 = vunpack.c.h.bf16 %v2543_v19  ;;  %vm2712_vm4 = vcmp.gt.f32.partialorder %v847_v14, 0.0 }
 0x1e9   : > { %v3691_v30 = vsel %vm2712_vm4, 4294967295, %v3690_v30  ;;  %p1939_p0 = scmp.ne.s32.totalorder (!%p1938_p13), %s3809_s25, 4 }
 0x1ea   : > { %662 = vadd.xlane.f32.xlu1 %v661_v9  ;;  %vm2696_vm15 = vcmp.gt.f32.partialorder %v845_v6, 0.0 }
 0x1eb   : > { %674 = vadd.xlane.f32.xlu2 %v673_v24  ;;  %v3687_v23 = vsel %vm2696_vm15, 4294967295, %v3686_v23 }
 0x1f0   : > { %653 = vadd.xlane.f32.xlu0 %v652_v15 }
 0x1f2   : > { %656 = vadd.xlane.f32.xlu1 %v655_v16 }
 0x1f3   : > { %665 = vadd.xlane.f32.xlu2 %v664_v27  ;;  %v3688_v27 = vmov 0 }
 0x1f4   : > { %1903 = vmatmul.msk.bf16.gmra.mxu0 %vm3654_vm12, %v683_v17  ;;  %1909 = vmatmul.msk.bf16.gmra.mxu1 %vm3654_vm12, %v683_v17  ;;  %v3684_v17 = vmov 0  ;;  %v3689_v27 = vsel %vm2706_vm2, 4294967295, %v3688_v27 }
 0x1f5   : > { %v3685_v17 = vsel %vm2688_vm13, 4294967295, %v3684_v17 }
 0x1f8   : > { %668 = vadd.xlane.f32.xlu0 %v667_v31 }
 0x1fa   : > { %677 = vadd.xlane.f32.xlu1 %v676_v7 }
 0x1fb   : > { %680 = vadd.xlane.f32.xlu2 %v679_v39 }
 0x204   : > { %1904 = vmatmul.msk.bf16.gmra.mxu0 %vm3654_vm12, %v684_v28  ;;  %1910 = vmatmul.msk.bf16.gmra.mxu1 %vm3654_vm12, %v684_v28 }
 0x214   : > { %1905 = vmatmul.msk.bf16.gmra.mxu0 %vm3654_vm12, %v685_v34  ;;  %1911 = vmatmul.msk.bf16.gmra.mxu1 %vm3654_vm12, %v685_v34 }
 0x224   : > { %1906 = vmatmul.msk.bf16.gmra.mxu0 %vm3654_vm12, %v686_v41  ;;  %1912 = vmatmul.msk.bf16.gmra.mxu1 %vm3654_vm12, %v686_v41 }
 0x234   : > { %1907 = vmatmul.msk.bf16.gmra.mxu0 %vm3654_vm12, %v687_v42  ;;  %1913 = vmatmul.msk.bf16.gmra.mxu1 %vm3654_vm12, %v687_v42 }
 0x253   : > { %v648_v40 = vpop.xlane.xlu0 %647 }
 0x255   : > { %v660_v55 = vpop.xlane.xlu1 %659 }
 0x256   : > { %v672_v52 = vpop.xlane.xlu2 %671 }
 0x25b   : > { %v651_v56 = vpop.xlane.xlu0 %650 }
 0x25d   : > { %v663_v13 = vpop.xlane.xlu1 %662 }
 0x25e   : > { %v2674_v3 = vpop.xlane.xlu2 %674 }
 0x261   : > { %v727_v43 = vpop.f32.mrf.mxu0  ;;  %v766_v44 = vpop.f32.mrf.mxu1 }
 0x262   : > { %v796_v59 = vmul.f32 2.0, %v727_v43  ;;  %v797_v62 = vmul.f32 2.0, %v766_v44 }
 0x263   : > { %v654_v19 = vpop.xlane.xlu0 %653 }
 0x264   : > { %v2680_v8 = vsub.f32 %v648_v40, %v796_v59  ;;  %v2683_v12 = vsub.f32 %v648_v40, %v797_v62 }
 0x266   : > { %v666_v44 = vpop.xlane.xlu2 %665 }
 0x269   : > { %v729_v45 = vpop.f32.mrf.mxu0  ;;  %v768_v32 = vpop.f32.mrf.mxu1 }
 0x26a   : > { %v798_v9 = vmul.f32 2.0, %v729_v45  ;;  %v799_v10 = vmul.f32 2.0, %v768_v32  ;;  %v849_v45 = vunpack.c.h.bf16 %v2547_v21 }
 0x26c   : > { %v2702_v20 = vsub.f32 %v651_v56, %v798_v9  ;;  %v2704_v24 = vsub.f32 %v651_v56, %v799_v10 }
 0x271   : > { %v732_v46 = vpop.f32.mrf.mxu0  ;;  %v771_v47 = vpop.f32.mrf.mxu1 }
 0x272   : > { %v800_v15 = vmul.f32 2.0, %v732_v46  ;;  %v801_v34 = vmul.f32 2.0, %v771_v47  ;;  %v3700_v46 = vmov 0 }
 0x274   : > { %v2724_v36 = vsub.f32 %v654_v19, %v800_v15  ;;  %v2781_v47 = vsub.f32 %v654_v19, %v801_v34 }
 0x279   : > { %v734_v48 = vpop.f32.mrf.mxu0  ;;  %v2666_v49 = vpop.f32.mrf.mxu1 }
 0x27a   : > { %v802_v42 = vmul.f32 2.0, %v734_v48  ;;  %v803_v48 = vmul.f32 2.0, %v2666_v49 }
 0x281   : > { %v737_v50 = vpop.f32.mrf.mxu0  ;;  %v776_v51 = vpop.f32.mrf.mxu1 }
 0x282   : > { %v804_v57 = vmul.f32 2.0, %v737_v50  ;;  %v805_v58 = vmul.f32 2.0, %v776_v51  ;;  %v657_v50 = vpop.xlane.xlu1 %656 }
 0x283   : > { %v2820_v6 = vsub.f32 %v657_v50, %v803_v48 }
 0x284   : > { %v2672_v63 = vsub.f32 %v660_v55, %v804_v57  ;;  %v2677_v4 = vsub.f32 %v660_v55, %v805_v58 }
 0x286   : > { %vm860_vm14 = vcmp.le.f32.partialorder %v2680_v8, %v2672_v63  ;;  %vm861_vm0 = vcmp.le.f32.partialorder %v2683_v12, %v2677_v4  ;;  %vm912_vm3 = vcmp.lt.f32.partialorder %v2672_v63, %v2680_v8  ;;  %vm913_vm6 = vcmp.lt.f32.partialorder %v2677_v4, %v2683_v12 }
 0x287   : > { %vm2718_vm5 = vmand %vm2688_vm13, %vm860_vm14 }
 0x288   : > { %vm2733_vm8 = vmand %vm2696_vm15, %vm861_vm0 }
 0x289   : > { %v739_v33 = vpop.f32.mrf.mxu0  ;;  %v778_v35 = vpop.f32.mrf.mxu1  ;;  %vm2745_vm10 = vmand %vm2688_vm13, %vm912_vm3 }
 0x28a   : > { %v806_v1 = vmul.f32 2.0, %v739_v33  ;;  %v807_v5 = vmul.f32 2.0, %v778_v35  ;;  %vm2755_vm11 = vmand %vm2696_vm15, %vm913_vm6  ;;  %v2346_v33 = vmov 0.0  }
 0x28c   : > { %v2686_v16 = vsub.f32 %v663_v13, %v806_v1  ;;  %v2694_v18 = vsub.f32 %v663_v13, %v807_v5  ;;  %v669_v1 = vpop.xlane.xlu0 %668 }
 0x28e   : > { %vm862_vm7 = vcmp.le.f32.partialorder %v2702_v20, %v2686_v16  ;;  %vm863_vm9 = vcmp.le.f32.partialorder %v2704_v24, %v2694_v18 }
 0x28f   : > { %vm2761_vm1 = vmand %vm2706_vm2, %vm862_vm7 }
 0x290   : > { %v3701_v46 = vsel %vm2761_vm1, 4294967295, %v3700_v46  ;;  %vm2771_vm6 = vmand %vm2712_vm4, %vm863_vm9 }
 0x291   : > { %v742_v53 = vpop.f32.mrf.mxu0  ;;  %v781_v54 = vpop.f32.mrf.mxu1 }
 0x292   : > { %v808_v38 = vmul.f32 2.0, %v742_v53  ;;  %v809_v43 = vmul.f32 2.0, %v781_v54 }
 0x294   : > { %v2784_v51 = vsub.f32 %v666_v44, %v808_v38  ;;  %v2789_v40 = vsub.f32 %v666_v44, %v809_v43  ;;  %v3727_v38 = vmov 0 }
 0x299   : > { %v2668_v60 = vpop.f32.mrf.mxu0  ;;  %v2670_v61 = vpop.f32.mrf.mxu1 }
 0x29a   : > { %v811_v62 = vmul.f32 2.0, %v2670_v61  ;;  %v850_v61 = vunpack.c.l.bf16 %v2549_v22 }
 0x2a1   : > { %v747_v25 = vpop.f32.mrf.mxu0  ;;  %v786_v26 = vpop.f32.mrf.mxu1 }
 0x2a2   : > { %v812_v28 = vmul.f32 2.0, %v747_v25  ;;  %v813_v29 = vmul.f32 2.0, %v786_v26  ;;  %v3720_v26 = vmov 0 }
 0x2a4   : > { %v836_v7 = vsub.f32 %v672_v52, %v812_v28  ;;  %v837_v39 = vsub.f32 %v672_v52, %v813_v29  ;;  %v810_v52 = vmul.f32 2.0, %v2668_v60  ;;  %v2808_v60 = vsub.f32 %v657_v50, %v802_v42 }
 0x2a6   : > { %vm876_vm14 = vcmp.le.f32.partialorder %v2680_v8, %v836_v7  ;;  %vm877_vm0 = vcmp.le.f32.partialorder %v2683_v12, %v837_v39  ;;  %vm928_vm3 = vcmp.le.f32.partialorder %v2672_v63, %v836_v7  ;;  %vm929_vm12 = vcmp.le.f32.partialorder %v2677_v4, %v837_v39 }
 0x2a7   : > { %vm884_vm7 = vmand %vm2718_vm5, %vm876_vm14  ;;  %vm964_vm2 = vcmp.lt.f32.partialorder %v836_v7, %v2680_v8  ;;  %vm965_vm1 = vcmp.lt.f32.partialorder %v837_v39, %v2683_v12  ;;  %vm980_vm15 = vcmp.lt.f32.partialorder %v836_v7, %v2672_v63  ;;  %vm981_vm13 = vcmp.lt.f32.partialorder %v837_v39, %v2677_v4  ;;  %v678_v4 = vpop.xlane.xlu1 %677 }
 0x2a8   : > { %vm885_vm9 = vmand %vm2733_vm8, %vm877_vm0  ;;  %v1914_v35 = vsel %vm884_vm7, 1.0, %v2346_v33  ;;  %vm2793_vm5 = vcmp.gt.f32.partialorder %v848_v37, 0.0  ;;  %vm2811_vm0 = vcmp.gt.f32.partialorder %v849_v45, 0.0  ;;  %v851_v8 = vunpack.c.h.bf16 %v2549_v22 }
 0x2a9   : > { %v749_v53 = vpop.f32.mrf.mxu0  ;;  %v788_v54 = vpop.f32.mrf.mxu1  ;;  %v1915_v55 = vsel %vm885_vm9, 1.0, %v2346_v33  ;;  %vm936_vm8 = vmand %vm2745_vm10, %vm928_vm3  ;;  %v3707_v0 = vsel %vm2811_vm0, 4294967295, %v3706_v0  ;;  %vm3708_vm10 = vnez %v3685_v17  ;;  %v2846_v13 = vsub.f32 %v669_v1, %v810_v52 }
 0x2aa   : > { %v814_v49 = vmul.f32 2.0, %v749_v53  ;;  %v815_v57 = vmul.f32 2.0, %v788_v54  ;;  %v2801_v58 = vpack.c.bf16 %v1915_v55, %v1914_v35  ;;  %vm937_vm14 = vmand %vm2755_vm11, %vm929_vm12  ;;  %v1922_v59 = vsel %vm936_vm8, 1.0, %v2346_v33  ;;  %v681_v52 = vpop.xlane.xlu2 %680 }
 0x2ab   : > { %v1923_v5 = vsel %vm937_vm14, 1.0, %v2346_v33  ;;  %vm972_vm3 = vmand %vm3708_vm10, %vm964_vm2  ;;  %vm864_vm12 = vcmp.le.f32.partialorder %v2724_v36, %v2784_v51  ;;  %vm3709_vm11 = vnez %v3687_v23  ;;  %v2860_v63 = vsub.f32 %v669_v1, %v811_v62 }
 0x2ac   : > { %v2823_v9 = vsub.f32 %v2674_v3, %v814_v49  ;;  %v2826_v10 = vsub.f32 %v2674_v3, %v815_v57  ;;  %vm973_vm7 = vmand %vm3709_vm11, %vm965_vm1  ;;  %v2838_v11 = vpack.c.bf16 %v1923_v5, %v1922_v59  ;;  %vm917_vm14 = vcmp.lt.f32.partialorder %v2789_v40, %v2781_v47 }
 0x2ad   : > { %vm2842_vm9 = vmand %vm972_vm3, %vm980_vm15  ;;  %vm3714_vm15 = vnez %v3701_v46  ;;  %v1020_v7 = vunpack.c.l.b16 %v2801_v58  ;;  %v1021_v39 = vunpack.c.h.b16 %v2801_v58 }
 0x2ae   : > { %vm878_vm1 = vcmp.le.f32.partialorder %v2702_v20, %v2823_v9  ;;  %vm879_vm8 = vcmp.le.f32.partialorder %v2704_v24, %v2826_v10  ;;  %vm2856_vm10 = vmand %vm973_vm7, %vm981_vm13  ;;  %vm966_vm13 = vcmp.lt.f32.partialorder %v2823_v9, %v2702_v20  ;;  %v1930_v17 = vsel %vm2842_vm9, 1.0, %v2346_v33 }
 0x2af   : > { %vm886_vm3 = vmand %vm3714_vm15, %vm878_vm1  ;;  %vm982_vm15 = vcmp.lt.f32.partialorder %v2823_v9, %v2686_v16  ;;  %v1931_v31 = vsel %vm2856_vm10, 1.0, %v2346_v33  ;;  %vm3729_vm10 = vnez %v3689_v27 }
 0x2b0   : > { %vm2866_vm11 = vmand %vm2793_vm5, %vm864_vm12  ;;  %v1916_v14 = vsel %vm886_vm3, 1.0, %v2346_v33  ;;  %vm3717_vm12 = vcmp.le.f32.partialorder %v2781_v47, %v2789_v40  ;;  %vm3724_vm3 = vcmp.lt.f32.partialorder %v2784_v51, %v2724_v36  ;;  %v1012_v41 = vpack.c.bf16 %v1931_v31, %v1930_v17  ;;  %v1080_v17 = vld [vmem:[#allocation5 + $0x20] sm:$0xff] }
 0x2b1   : > { %vm887_vm2 = vmand %vm2771_vm6, %vm879_vm8  ;;  %v752_v19 = vpop.f32.mrf.mxu0  ;;  %v791_v23 = vpop.f32.mrf.mxu1  ;;  %vm2896_vm6 = vcmp.gt.f32.partialorder %v850_v61, 0.0  ;;  %vm2900_vm8 = vcmp.gt.f32.partialorder %v851_v8, 0.0 }
 0x2b2   : > { %vm2884_vm1 = vmand %vm2811_vm0, %vm3717_vm12  ;;  %v1917_v25 = vsel %vm887_vm2, 1.0, %v2346_v33  ;;  %v3721_v26 = vsel %vm2896_vm6, 4294967295, %v3720_v26  ;;  %v816_v34 = vmul.f32 2.0, %v752_v19  ;;  %v817_v2 = vmul.f32 2.0, %v791_v23 }
 0x2b3   : > { %vm2909_vm12 = vmand %vm2793_vm5, %vm3724_vm3  ;;  %v909_v37 = vpack.c.bf16 %v1917_v25, %v1916_v14  ;;  %v1060_v57 = vunpack.c.l.b16 %v1012_v41  ;;  %v1061_v15 = vunpack.c.h.b16 %v1012_v41 }
 0x2b4   : > { %vm2923_vm9 = vmand %vm2811_vm0, %vm917_vm14  ;;  %v840_v42 = vsub.f32 %v678_v4, %v816_v34  ;;  %v841_v43 = vsub.f32 %v678_v4, %v817_v2  ;;  %vm3730_vm14 = vcmp.lt.f32.partialorder %v2826_v10, %v2704_v24  ;;  %vm3733_vm0 = vcmp.le.f32.partialorder %v2808_v60, %v2846_v13 }
 0x2b5   : > { %v3728_v38 = vsel %vm2923_vm9, 4294967295, %v3727_v38  ;;  %vm974_vm7 = vmand %vm3729_vm10, %vm966_vm13  ;;  %v1022_v44 = vunpack.c.l.b16 %v909_v37  ;;  %v1023_v45 = vunpack.c.h.b16 %v909_v37 }
 0x2b6   : > { %vm975_vm3 = vmand %vm2712_vm4, %vm3730_vm14  ;;  %vm968_vm13 = vcmp.lt.f32.partialorder %v840_v42, %v2724_v36  ;;  %vm3737_vm14 = vcmp.le.f32.partialorder %v2820_v6, %v2860_v63  ;;  %vm880_vm4 = vcmp.le.f32.partialorder %v2724_v36, %v840_v42 }
 0x2b7   : > { %vm2944_vm2 = vmand %vm974_vm7, %vm982_vm15  ;;  %v1028_v46 = vpack.c.b16 %v1022_v44, %v1020_v7  ;;  %v1029_v21 = vpack.c.b16 %v1023_v45, %v1021_v39  ;;  %vm3736_vm7 = vcmp.lt.f32.partialorder %v2826_v10, %v2694_v18 }
 0x2b8   : > { %vm2955_vm9 = vmand %vm2896_vm6, %vm3733_vm0  ;;  %vm881_vm0 = vcmp.le.f32.partialorder %v2781_v47, %v841_v43  ;;  %v1932_v36 = vsel %vm2944_vm2, 1.0, %v2346_v33  ;;  %vm3742_vm2 = vnez %v3728_v38 }
 0x2b9   : > { %vm991_vm15 = vmand %vm975_vm3, %vm3736_vm7  ;;  %1098 = vmatmul.bf16.vlgmr.msra.gmra.mxu2 %v1028_v46  ;;  %1137 = vmatmul.bf16.vlgmr.msra.gmra.mxu3 %v1029_v21  ;;  %vm932_vm7 = vcmp.le.f32.partialorder %v2784_v51, %v840_v42  ;;  %v754_v54 = vpop.f32.mrf.mxu0  ;;  %v793_v55 = vpop.f32.mrf.mxu1  ;;  %v1040_v46 = vunpack.c.l.b16 %v2838_v11  ;;  %v1041_v21 = vunpack.c.h.b16 %v2838_v11 }
 0x2ba   : > { %vm2967_vm10 = vmand %vm2900_vm8, %vm3737_vm14  ;;  %vm933_vm14 = vcmp.le.f32.partialorder %v2789_v40, %v841_v43  ;;  %v1933_v53 = vsel %vm991_vm15, 1.0, %v2346_v33  ;;  %v818_v58 = vmul.f32 2.0, %v754_v54  ;;  %v819_v59 = vmul.f32 2.0, %v793_v55 }
 0x2bb   : > { %vm2975_vm6 = vmand %vm2793_vm5, %vm968_vm13  ;;  %v1013_v49 = vpack.c.bf16 %v1933_v53, %v1932_v36  ;;  %v1076_v53 = vld [vmem:[#allocation5] sm:$0xff] }
 0x2bc   : > { %vm888_vm3 = vmand %vm2866_vm11, %vm880_vm4  ;;  %vm984_vm11 = vcmp.lt.f32.partialorder %v840_v42, %v2784_v51  ;;  %v2999_v3 = vsub.f32 %v681_v52, %v818_v58  ;;  %v3001_v22 = vsub.f32 %v681_v52, %v819_v59 }
 0x2bd   : > { %vm889_vm5 = vmand %vm2884_vm1, %vm881_vm0  ;;  %v1918_v56 = vsel %vm888_vm3, 1.0, %v2346_v33  ;;  %v1062_v61 = vunpack.c.l.b16 %v1013_v49  ;;  %v1063_v8 = vunpack.c.h.b16 %v1013_v49  ;;  %vm3743_vm1 = vcmp.lt.f32.partialorder %v841_v43, %v2781_v47  ;;  %v1077_v49 = vld [vmem:[#allocation5 + $0x8] sm:$0xff] }
 0x2be   : > { %v1919_v62 = vsel %vm889_vm5, 1.0, %v2346_v33  ;;  %vm940_vm4 = vmand %vm2909_vm12, %vm932_vm7  ;;  %vm3744_vm12 = vnez %v3707_v0  ;;  %vm985_vm0 = vcmp.lt.f32.partialorder %v841_v43, %v2789_v40  ;;  %vm914_vm3 = vcmp.lt.f32.partialorder %v2686_v16, %v2702_v20 }
 0x2bf   : > { %v910_v1 = vpack.c.bf16 %v1919_v62, %v1918_v56  ;;  %vm941_vm13 = vmand %vm3742_vm2, %vm933_vm14  ;;  %v1926_v5 = vsel %vm940_vm4, 1.0, %v2346_v33  ;;  %v3013_v14 = vpack.c.b16 %v1062_v61, %v1060_v57  ;;  %vm970_vm14 = vcmp.lt.f32.partialorder %v2999_v3, %v2808_v60 }
 0x2c0   : > { %v1927_v12 = vsel %vm941_vm13, 1.0, %v2346_v33  ;;  %vm977_vm15 = vmand %vm3744_vm12, %vm3743_vm1  ;;  %vm882_vm4 = vcmp.le.f32.partialorder %v2808_v60, %v2999_v3  ;;  %vm883_vm2 = vcmp.le.f32.partialorder %v2820_v6, %v3001_v22  ;;  %v3038_v51 = vpack.c.b16 %v1063_v8, %v1061_v15 }
 0x2c1   : > { %v3011_v4 = vpack.c.bf16 %v1927_v12, %v1926_v5  ;;  %vm3019_vm7 = vmand %vm2975_vm6, %vm984_vm11  ;;  %vm915_vm6 = vcmp.lt.f32.partialorder %v2694_v18, %v2704_v24  ;;  %vm986_vm12 = vcmp.lt.f32.partialorder %v2999_v3, %v2846_v13  ;;  %vm987_vm5 = vcmp.lt.f32.partialorder %v3001_v22, %v2860_v63 }
 0x2c2   : > { %vm993_vm13 = vmand %vm977_vm15, %vm985_vm0  ;;  %v1934_v0 = vsel %vm3019_vm7, 1.0, %v2346_v33  ;;  %v1025_v31 = vunpack.c.h.b16 %v910_v1  ;;  %vm3754_vm7 = vcmp.lt.f32.partialorder %v3001_v22, %v2820_v6 }
 0x2c3   : > { %vm890_vm1 = vmand %vm2955_vm9, %vm882_vm4  ;;  %vm3747_vm9 = vnez %v3689_v27  ;;  %v1935_v19 = vsel %vm993_vm13, 1.0, %v2346_v33  ;;  %vm3753_vm4 = vnez %v3721_v26  ;;  %v1024_v27 = vunpack.c.l.b16 %v910_v1  ;;  %v1078_v1 = vld [vmem:[#allocation5 + $0x10] sm:$0xff] }
 0x2c4   : > { %vm891_vm11 = vmand %vm2967_vm10, %vm883_vm2  ;;  %v1920_v47 = vsel %vm890_vm1, 1.0, %v2346_v33  ;;  %vm3750_vm10 = vnez %v3691_v30  ;;  %v1014_v20 = vpack.c.bf16 %v1935_v19, %v1934_v0  ;;  %vm931_vm1 = vcmp.le.f32.partialorder %v2694_v18, %v2826_v10  ;;  %v1081_v0 = vld [vmem:[#allocation5 + $0x28] sm:$0xff] }
 0x2c5   : > { %v1921_v40 = vsel %vm891_vm11, 1.0, %v2346_v33  ;;  %vm3050_vm15 = vmand %vm3747_vm9, %vm914_vm3  ;;  %vm930_vm3 = vcmp.le.f32.partialorder %v2686_v16, %v2823_v9  ;;  %v1044_v35 = vunpack.c.l.b16 %v3011_v4 }
 0x2c6   : > { %v911_v23 = vpack.c.bf16 %v1921_v40, %v1920_v47  ;;  %vm3060_vm0 = vmand %vm3750_vm10, %vm915_vm6  ;;  %v1064_v10 = vunpack.c.l.b16 %v1014_v20  ;;  %v1065_v38 = vunpack.c.h.b16 %v1014_v20 }
 0x2c7   : > { %vm978_vm2 = vmand %vm3753_vm4, %vm970_vm14 }
 0x2c8   : > { %v1026_v29 = vunpack.c.l.b16 %v911_v23  ;;  %v1027_v34 = vunpack.c.h.b16 %v911_v23  ;;  %vm979_vm13 = vmand %vm2900_vm8, %vm3754_vm7 }
 0x2c9   : > { %vm994_vm6 = vmand %vm978_vm2, %vm986_vm12  ;;  %vm919_vm12 = vcmp.lt.f32.partialorder %v2860_v63, %v2820_v6 }
 0x2ca   : > { %v1030_v16 = vpack.c.b16 %v1026_v29, %v1024_v27  ;;  %v1031_v30 = vpack.c.b16 %v1027_v34, %v1025_v31  ;;  %vm995_vm14 = vmand %vm979_vm13, %vm987_vm5  ;;  %v1936_v9 = vsel %vm994_vm6, 1.0, %v2346_v33  ;;  %vm918_vm5 = vcmp.lt.f32.partialorder %v2846_v13, %v2808_v60  ;;  %v1082_v27 = vld [vmem:[#allocation5 + $0x30] sm:$0xff] }
 0x2cb   : > { %vm938_vm11 = vmand %vm3050_vm15, %vm930_vm3  ;;  %v1937_v2 = vsel %vm995_vm14, 1.0, %v2346_v33  ;;  %vm934_vm15 = vcmp.le.f32.partialorder %v2846_v13, %v2999_v3 }
 0x2cc   : > { %1103 = vmatmul.bf16.gmra.mxu2 %v1030_v16  ;;  %1142 = vmatmul.bf16.gmra.mxu3 %v1031_v30  ;;  %vm939_vm9 = vmand %vm3060_vm0, %vm931_vm1  ;;  %v1015_v18 = vpack.c.bf16 %v1937_v2, %v1936_v9  ;;  %v1924_v39 = vsel %vm938_vm11, 1.0, %v2346_v33  ;;  %vm935_vm0 = vcmp.le.f32.partialorder %v2860_v63, %v3001_v22  ;;  %v1045_v63 = vunpack.c.h.b16 %v3011_v4  ;;  %v1079_v22 = vld [vmem:[#allocation5 + $0x18] sm:$0xff] }
 0x2cd   : > { %v1925_v41 = vsel %vm939_vm9, 1.0, %v2346_v33  ;;  %vm926_vm10 = vmand %vm3753_vm4, %vm918_vm5  ;;  %v1083_v30 = vld [vmem:[#allocation5 + $0x38] sm:$0xff] }
 0x2ce   : > { %v1066_v37 = vunpack.c.l.b16 %v1015_v18  ;;  %v1067_v7 = vunpack.c.h.b16 %v1015_v18  ;;  %v961_v44 = vpack.c.bf16 %v1925_v41, %v1924_v39  ;;  %vm927_vm3 = vmand %vm2900_vm8, %vm919_vm12  ;;  %vm3755_vm8 = vcmask 64512  }
 0x2cf   : > { %vm942_vm2 = vmand %vm926_vm10, %vm934_vm15 }
 0x2d0   : > { %v1070_v42 = vpack.c.b16 %v1066_v37, %v1064_v10  ;;  %v1071_v43 = vpack.c.b16 %v1067_v7, %v1065_v38  ;;  %v1042_v45 = vunpack.c.l.b16 %v961_v44  ;;  %v1043_v32 = vunpack.c.h.b16 %v961_v44  ;;  %vm943_vm7 = vmand %vm927_vm3, %vm935_vm0  ;;  %v1084_v37 = vld [vmem:[#allocation5 + $0x40] sm:$0xff] }
 0x2d1   : > { %v1928_v6 = vsel %vm942_vm2, 1.0, %v2346_v33  ;;  %v1929_v11 = vsel %vm943_vm7, 1.0, %v2346_v33  ;;  %vm3756_vm4 = vmmov %vm3755_vm8 }
 0x2d2   : > { %v1048_v48 = vpack.c.b16 %v1042_v45, %v1040_v46  ;;  %v1049_v60 = vpack.c.b16 %v1043_v32, %v1041_v21  ;;  %v963_v13 = vpack.c.bf16 %v1929_v11, %v1928_v6  ;;  %vm3757_vm13 = vmmov %vm3756_vm4  ;;  %v1086_v46 = vld [vmem:[#allocation5 + $0x50] sm:$0xff]  ;;  %v1087_v11 = vld [vmem:[#allocation5 + $0x58] sm:$0xff] }
 0x2d3   : > { %vm3758_vm1 = vmmov %vm3756_vm4 }
 0x2d4   : > { %v1046_v50 = vunpack.c.l.b16 %v963_v13  ;;  %v1047_v26 = vunpack.c.h.b16 %v963_v13  ;;  %vm3759_vm6 = vmmov %vm3758_vm1 }
 0x2d5   : > { %vm3760_vm14 = vmmov %vm3758_vm1 }
 0x2d6   : > { %v1050_v52 = vpack.c.b16 %v1046_v50, %v1044_v35  ;;  %v1051_v36 = vpack.c.b16 %v1047_v26, %v1045_v63  ;;  %vm3761_vm11 = vmmov %vm3758_vm1 }
 0x2d7   : > { %vm3762_vm9 = vmmov %vm3758_vm1 }
 0x2d8   : > { %vm3763_vm5 = vmmov %vm3758_vm1 }
 0x2d9   : > { %vm3764_vm12 = vmmov %vm3758_vm1 }
 0x2da   : > { %vm3765_vm15 = vmmov %vm3758_vm1 }
 0x2db   : > { %vm3766_vm10 = vmmov %vm3758_vm1 }
 0x2dc   : > { %1108 = vmatmul.bf16.gmra.mxu2 %v1048_v48  ;;  %1147 = vmatmul.bf16.gmra.mxu3 %v1049_v60 }
 0x2ec   : > { %1113 = vmatmul.bf16.gmra.mxu2 %v1050_v52  ;;  %1152 = vmatmul.bf16.gmra.mxu3 %v1051_v36 }
 0x2fc   : > { %1118 = vmatmul.bf16.gmra.mxu2 %v3013_v14  ;;  %1157 = vmatmul.bf16.gmra.mxu3 %v3038_v51 }
 0x30c   : > { %1123 = vmatmul.bf16.gmra.mxu2 %v1070_v42  ;;  %1162 = vmatmul.bf16.gmra.mxu3 %v1071_v43  ;;  %v1085_v42 = vld [vmem:[#allocation5 + $0x48] sm:$0xff] }
 0x33c   : > { %v1099_v28 = vpop.f32.mrf.mxu2  ;;  %v1138_v33 = vpop.f32.mrf.mxu3 }
 0x33d   : > { %v1139_v54 = vadd.f32 %v1138_v33, %v1099_v28 }
 0x33f   : > { %v1168_v55 = vadd.f32 %v1139_v54, %v1076_v53 }
 0x341   : > { %1180 = vst.msk [vmem:[#allocation5] sm:$0xff] %vm3755_vm8, %v1168_v55 }
 0x344   : > { %v1101_v56 = vpop.f32.mrf.mxu2  ;;  %v1140_v57 = vpop.f32.mrf.mxu3 }
 0x345   : > { %v1141_v58 = vadd.f32 %v1140_v57, %v1101_v56 }
 0x347   : > { %v1169_v59 = vadd.f32 %v1141_v58, %v1077_v49 }
 0x349   : > { %1181 = vst.msk [vmem:[#allocation5 + $0x8] sm:$0xff] %vm3756_vm4, %v1169_v59 }
 0x34f   : > { %v1104_v62 = vpop.f32.mrf.mxu2  ;;  %v1143_v5 = vpop.f32.mrf.mxu3 }
 0x350   : > { %v1144_v61 = vadd.f32 %v1143_v5, %v1104_v62 }
 0x352   : > { %v1170_v8 = vadd.f32 %v1144_v61, %v1078_v1 }
 0x354   : > { %1182 = vst.msk [vmem:[#allocation5 + $0x10] sm:$0xff] %vm3757_vm13, %v1170_v8 }
 0x357   : > { %v1106_v3 = vpop.f32.mrf.mxu2  ;;  %v1145_v12 = vpop.f32.mrf.mxu3 }
 0x358   : > { %v1146_v4 = vadd.f32 %v1145_v12, %v1106_v3 }
 0x35a   : > { %v1171_v14 = vadd.f32 %v1146_v4, %v1079_v22 }
 0x35c   : > { %1183 = vst.msk [vmem:[#allocation5 + $0x18] sm:$0xff] %vm3758_vm1, %v1171_v14 }
 0x35f   : > { %v1109_v15 = vpop.f32.mrf.mxu2  ;;  %v1148_v47 = vpop.f32.mrf.mxu3 }
 0x360   : > { %v1149_v51 = vadd.f32 %v1148_v47, %v1109_v15 }
 0x362   : > { %v1172_v40 = vadd.f32 %v1149_v51, %v1080_v17 }
 0x364   : > { %1184 = vst.msk [vmem:[#allocation5 + $0x20] sm:$0xff] %vm3759_vm6, %v1172_v40 }
 0x367   : > { %v1111_v24 = vpop.f32.mrf.mxu2  ;;  %v1150_v19 = vpop.f32.mrf.mxu3 }
 0x368   : > { %v1151_v23 = vadd.f32 %v1150_v19, %v1111_v24 }
 0x36a   : > { %v1173_v25 = vadd.f32 %v1151_v23, %v1081_v0 }
 0x36c   : > { %1185 = vst.msk [vmem:[#allocation5 + $0x28] sm:$0xff] %vm3760_vm14, %v1173_v25 }
 0x36f   : > { %v1114_v20 = vpop.f32.mrf.mxu2  ;;  %v1153_v29 = vpop.f32.mrf.mxu3 }
 0x370   : > { %v1154_v31 = vadd.f32 %v1153_v29, %v1114_v20 }
 0x372   : > { %v1174_v34 = vadd.f32 %v1154_v31, %v1082_v27 }
 0x374   : > { %1186 = vst.msk [vmem:[#allocation5 + $0x30] sm:$0xff] %vm3761_vm11, %v1174_v34 }
 0x377   : > { %v1116_v16 = vpop.f32.mrf.mxu2  ;;  %v1155_v9 = vpop.f32.mrf.mxu3 }
 0x378   : > { %v1156_v2 = vadd.f32 %v1155_v9, %v1116_v16 }
 0x37a   : > { %v1175_v18 = vadd.f32 %v1156_v2, %v1083_v30 }
 0x37c   : > { %1187 = vst.msk [vmem:[#allocation5 + $0x38] sm:$0xff] %vm3762_vm9, %v1175_v18 }
 0x37f   : > { %v1119_v10 = vpop.f32.mrf.mxu2  ;;  %v1158_v38 = vpop.f32.mrf.mxu3 }
 0x380   : > { %v1159_v7 = vadd.f32 %v1158_v38, %v1119_v10 }
 0x382   : > { %v1176_v39 = vadd.f32 %v1159_v7, %v1084_v37 }
 0x384   : > { %1188 = vst.msk [vmem:[#allocation5 + $0x40] sm:$0xff] %vm3763_vm5, %v1176_v39 }
 0x387   : > { %v1121_v41 = vpop.f32.mrf.mxu2  ;;  %v1160_v43 = vpop.f32.mrf.mxu3 }
 0x388   : > { %v1161_v44 = vadd.f32 %v1160_v43, %v1121_v41 }
 0x38a   : > { %v1177_v45 = vadd.f32 %v1161_v44, %v1085_v42 }
 0x38c   : > { %1189 = vst.msk [vmem:[#allocation5 + $0x48] sm:$0xff] %vm3764_vm12, %v1177_v45 }
 0x38f   : > { %v1124_v32 = vpop.f32.mrf.mxu2  ;;  %v1163_v21 = vpop.f32.mrf.mxu3 }
 0x390   : > { %v1164_v48 = vadd.f32 %v1163_v21, %v1124_v32 }
 0x392   : > { %v1178_v60 = vadd.f32 %v1164_v48, %v1086_v46 }
 0x394   : > { %1190 = vst.msk [vmem:[#allocation5 + $0x50] sm:$0xff] %vm3765_vm15, %v1178_v60 }
 0x397   : > { %v1126_v6 = vpop.f32.mrf.mxu2  ;;  %v1165_v13 = vpop.f32.mrf.mxu3 }
 0x398   : > { %v1166_v50 = vadd.f32 %v1165_v13, %v1126_v6  ;;  %1194 = sbr.rel (%p1938_p13) target bundleno = 1248 (0x4e0), region = 60 }
 0x39a   : > { %v1179_v26 = vadd.f32 %v1166_v50, %v1087_v11 }
 0x39c   : > { %1191 = vst.msk [vmem:[#allocation5 + $0x58] sm:$0xff] %vm3766_vm10, %v1179_v26 }
 0x39d   : > { %v3125_v35 = vld [vmem:[#allocation5 + $0x20] sm:$0xff]  ;;  %v3127_v63 = vld [vmem:[#allocation5 + $0x10] sm:$0xff]  ;;  %v2347_v36 = vmov 6   ;;  %v3134_v54 = vld [vmem:[#allocation5 + $0x28] sm:$0xff]  ;;  %v2348_v17 = vmov 0  }
 0x39e   : > { %v3129_v52 = vld [vmem:[#allocation5] sm:$0xff]  ;;  %2103 = vset.pattern.permute.xlu2 %v2347_v36  ;;  %2102 = vset.pattern.permute.xlu1 %v2347_v36  ;;  %v1211_v28 = vmax.f32 %v3125_v35, 1.0  ;;  %v1209_v53 = vmax.f32 %v3127_v63, 1.0  ;;  %v3136_v55 = vld [vmem:[#allocation5 + $0x18] sm:$0xff]  ;;  %v3138_v56 = vld [vmem:[#allocation5 + $0x8] sm:$0xff]  ;;  %v1212_v49 = vmax.f32 %v3134_v54, 1.0 }
 0x39f   : > { %v1207_v33 = vmax.f32 %v3129_v52, 1.0  ;;  %2101 = vset.pattern.permute.xlu0 %v2347_v36  ;;  %v1210_v57 = vmax.f32 %v3136_v55, 1.0  ;;  %v1208_v58 = vmax.f32 %v3138_v56, 1.0  ;;  %v3143_v59 = vld [vmem:[#allocation5 + $0x40] sm:$0xff]  ;;  %v3145_v62 = vld [vmem:[#allocation5 + $0x38] sm:$0xff]  ;;  %v3147_v1 = vld [vmem:[#allocation5 + $0x30] sm:$0xff] }
 0x3a0   : > { %1241 = vperm.xlu2 %2103, %v1211_v28   ;;  %1231 = vperm.xlu1 %2102, %v1209_v53   ;;  %v1215_v5 = vmax.f32 %v3143_v59, 1.0  ;;  %v1214_v61 = vmax.f32 %v3145_v62, 1.0  ;;  %v1213_v8 = vmax.f32 %v3147_v1, 1.0  ;;  %v3154_v22 = vld [vmem:[#allocation5 + $0x50] sm:$0xff]  ;;  %v3156_v12 = vld [vmem:[#allocation5 + $0x48] sm:$0xff]  ;;  %vm1461_vm0 = vcmp.gt.f32.partialorder %v3127_v63, 0.0 }
 0x3a1   : > { %1221 = vperm.xlu0 %2101, %v1207_v33   ;;  %v1217_v14 = vmax.f32 %v3154_v22, 1.0  ;;  %v1216_v15 = vmax.f32 %v3156_v12, 1.0  ;;  %vm1460_vm3 = vcmp.gt.f32.partialorder %v3138_v56, 0.0  ;;  %vm1459_vm2 = vcmp.gt.f32.partialorder %v3129_v52, 0.0 }
 0x3a2   : > { %v1485_v47 = vsel %vm1461_vm0, 1, %v2348_v17  ;;  %v1484_v51 = vsel %vm1460_vm3, 1, %v2348_v17  ;;  %v1483_v40 = vsel %vm1459_vm2, 1, %v2348_v17  ;;  %vm1464_vm7 = vcmp.gt.f32.partialorder %v3134_v54, 0.0 }
 0x3a3   : > { %v3152_v3 = vld [vmem:[#allocation5 + $0x58] sm:$0xff]  ;;  %vm1463_vm8 = vcmp.gt.f32.partialorder %v3125_v35, 0.0  ;;  %vm1462_vm4 = vcmp.gt.f32.partialorder %v3136_v55, 0.0  ;;  %v1488_v24 = vsel %vm1464_vm7, 1, %v2348_v17  ;;  %vm1467_vm13 = vcmp.gt.f32.partialorder %v3143_v59, 0.0 }
 0x3a4   : > { %v1218_v4 = vmax.f32 %v3152_v3, 1.0  ;;  %v1487_v0 = vsel %vm1463_vm8, 1, %v2348_v17  ;;  %v1486_v19 = vsel %vm1462_vm4, 1, %v2348_v17  ;;  %vm1466_vm1 = vcmp.gt.f32.partialorder %v3145_v62, 0.0 }
 0x3a5   : > { %vm1465_vm6 = vcmp.gt.f32.partialorder %v3147_v1, 0.0  ;;  %v1491_v23 = vsel %vm1467_vm13, 1, %v2348_v17  ;;  %v1490_v25 = vsel %vm1466_vm1, 1, %v2348_v17  ;;  %vm1470_vm14 = vcmp.gt.f32.partialorder %v3152_v3, 0.0 }
 0x3a6   : > { %v1489_v20 = vsel %vm1465_vm6, 1, %v2348_v17  ;;  %vm1469_vm11 = vcmp.gt.f32.partialorder %v3154_v22, 0.0  ;;  %vm1468_vm9 = vcmp.gt.f32.partialorder %v3156_v12, 0.0  ;;  %v1494_v27 = vsel %vm1470_vm14, 1, %v2348_v17 }
 0x3a7   : > { %v1493_v29 = vsel %vm1469_vm11, 1, %v2348_v17  ;;  %v1492_v31 = vsel %vm1468_vm9, 1, %v2348_v17 }
 0x3a8   : > { %1246 = vperm.xlu2 %2103, %v1212_v49   ;;  %1236 = vperm.xlu1 %2102, %v1210_v57  }
 0x3a9   : > { %1226 = vperm.xlu0 %2101, %v1208_v58  }
 0x3b0   : > { %1261 = vperm.xlu2 %2103, %v1215_v5   ;;  %1256 = vperm.xlu1 %2102, %v1214_v61  }
 0x3b1   : > { %1251 = vperm.xlu0 %2101, %v1213_v8  }
 0x3b8   : > { %1276 = vperm.xlu2 %2103, %v1218_v4   ;;  %1271 = vperm.xlu1 %2102, %v1217_v14  }
 0x3b9   : > { %1266 = vperm.xlu0 %2101, %v1216_v15  }
 0x3c0   : > { %1502 = vperm.xlu2 %2103, %v1485_v47   ;;  %1499 = vperm.xlu1 %2102, %v1484_v51  }
 0x3c1   : > { %1496 = vperm.xlu0 %2101, %v1483_v40  }
 0x3c8   : > { %1511 = vperm.xlu2 %2103, %v1488_v24   ;;  %1508 = vperm.xlu1 %2102, %v1487_v0  }
 0x3c9   : > { %1505 = vperm.xlu0 %2101, %v1486_v19  }
 0x3d0   : > { %1520 = vperm.xlu2 %2103, %v1491_v23   ;;  %1517 = vperm.xlu1 %2102, %v1490_v25  }
 0x3d1   : > { %1514 = vperm.xlu0 %2101, %v1489_v20  }
 0x3d8   : > { %1529 = vperm.xlu2 %2103, %v1494_v27   ;;  %1526 = vperm.xlu1 %2102, %v1493_v29  }
 0x3d9   : > { %1523 = vperm.xlu0 %2101, %v1492_v31  }
 0x3fa   : > { %v3173_v34 = vpop.permute.xlu2 %1241 }
 0x3fb   : > { %v1348_v13 = vand.u32 2147483647, %v3173_v34  ;;  %v1350_v17 = vand.u32 2147483648, %v3173_v34  ;;  %vm1344_vm4 = vweird.f32 %v3173_v34 }
 0x402   : > { %v1247_v16 = vpop.permute.xlu2 %1246 }
 0x403   : > { %2104 = vrcp.f32 %v1247_v16  ;;  %vm1359_vm5 = vweird.f32 %v1247_v16  ;;  %v1363_v45 = vand.u32 2147483647, %v1247_v16  ;;  %v1365_v32 = vand.u32 2147483648, %v1247_v16 }
 0x404   : > { %2106 = vrcp.f32 %v3173_v34 }
 0x405   : > { %vm3207_vm10 = vcmp.eq.f32.partialorder %v1363_v45, 8.507059e+37  ;;  %v1366_v53 = vor.u32 1.1754944e-38, %v1365_v32 }
 0x409   : > { %v2105_v30 = vpop.eup %2104 }
 0x40a   : > { %v3176_v9 = vpop.permute.xlu2 %1261  ;;  %v1355_v2 = vmul.f32 %v2105_v30, %v1247_v16  ;;  %v3179_v18 = vpop.eup %2106  ;;  %vm1360_vm12 = vweird.f32 %v2105_v30 }
 0x40b   : > { %2108 = vrcp.f32 %v3176_v9  ;;  %v1340_v38 = vmul.f32 %v3179_v18, %v3173_v34  ;;  %vm3195_vm15 = vmor %vm1359_vm5, %vm1360_vm12  ;;  %v1408_v58 = vand.u32 2147483647, %v3176_v9  ;;  %v1410_v8 = vand.u32 2147483648, %v3176_v9 }
 0x40c   : > { %v1356_v10 = vsub.f32 1.0, %v1355_v2  ;;  %vm1404_vm0 = vweird.f32 %v3176_v9  ;;  %vm1345_vm13 = vweird.f32 %v3179_v18 }
 0x40d   : > { %v1341_v44 = vsub.f32 1.0, %v1340_v38  ;;  %vm3233_vm7 = vcmp.eq.f32.partialorder %v1408_v58, 8.507059e+37  ;;  %v1411_v20 = vor.u32 1.1754944e-38, %v1410_v8 }
 0x40e   : > { %v1357_v42 = vmul.f32 %v2105_v30, %v1356_v10  ;;  %v1476_v10 = vld [vmem:[#allocation4 + $0x28] sm:$0xff] }
 0x40f   : > { %v1342_v11 = vmul.f32 %v3179_v18, %v1341_v44 }
 0x410   : > { %v1358_v46 = vadd.f32 %v2105_v30, %v1357_v42 }
 0x411   : > { %v3181_v37 = vpop.eup %2108  ;;  %v3225_v15 = vadd.f32 %v3179_v18, %v1342_v11 }
 0x412   : > { %v3185_v7 = vpop.permute.xlu2 %1276  ;;  %v1232_v39 = vpop.permute.xlu1 %1231  ;;  %v1400_v43 = vmul.f32 %v3181_v37, %v3176_v9  ;;  %v1362_v61 = vsel %vm3195_vm15, %v2105_v30, %v1358_v46  ;;  %vm1405_vm2 = vweird.f32 %v3181_v37  ;;  %vm3780_vm15 = vcmask 64512  }
 0x413   : > { %2110 = vrcp.f32 %v3185_v7  ;;  %v3188_v41 = vpop.permute.xlu0 %1221  ;;  %v1318_v47 = vand.u32 2147483647, %v1232_v39  ;;  %v1320_v51 = vand.u32 2147483648, %v1232_v39  ;;  %v1367_v24 = vsel %vm3207_vm10, %v1366_v53, %v1362_v61  ;;  %vm3257_vm11 = vmor %vm1404_vm0, %vm1405_vm2 }
 0x414   : > { %2112 = vrcp.f32 %v1232_v39  ;;  %v1401_v21 = vsub.f32 1.0, %v1400_v43  ;;  %vm1314_vm8 = vweird.f32 %v1232_v39  ;;  %vm1449_vm1 = vweird.f32 %v3185_v7 }
 0x415   : > { %2114 = vrcp.f32 %v3188_v41  ;;  %v1453_v31 = vand.u32 2147483647, %v3185_v7  ;;  %vm1319_vm14 = vcmp.eq.f32.partialorder %v1318_v47, 8.507059e+37  ;;  %v1321_v30 = vor.u32 1.1754944e-38, %v1320_v51 }
 0x416   : > { %v1402_v57 = vmul.f32 %v3181_v37, %v1401_v21  ;;  %v1368_v2 = vmul.f32 %v1367_v24, %v3134_v54  ;;  %v1473_v21 = vld [vmem:[#allocation4 + $0x10] sm:$0xff]  ;;  %vm1284_vm10 = vweird.f32 %v3188_v41  ;;  %v1290_v51 = vand.u32 2147483648, %v3188_v41  ;;  %v1479_v24 = vld [vmem:[#allocation4 + $0x40] sm:$0xff] }
 0x417   : > { %vm3279_vm5 = vcmp.eq.f32.partialorder %v1453_v31, 8.507059e+37 }
 0x418   : > { %v1403_v0 = vadd.f32 %v3181_v37, %v1402_v57 }
 0x419   : > { %v3193_v48 = vpop.eup %2110 }
 0x41a   : > { %v2113_v6 = vpop.eup %2112  ;;  %v3201_v50 = vpop.permute.xlu2 %1502  ;;  %v1445_v5 = vmul.f32 %v3193_v48, %v3185_v7  ;;  %v1407_v11 = vsel %vm3257_vm11, %v3181_v37, %v1403_v0  ;;  %vm1450_vm0 = vweird.f32 %v3193_v48 }
 0x41b   : > { %v3203_v26 = vpop.permute.xlu1 %1236  ;;  %v3205_v36 = vpop.eup %2114  ;;  %v1310_v33 = vmul.f32 %v2113_v6, %v1232_v39  ;;  %vm1315_vm3 = vweird.f32 %v2113_v6  ;;  %vm1533_vm12 = vcmp.eq.s32.totalorder %v3201_v50, 1  ;;  %v1412_v61 = vsel %vm3233_vm7, %v1411_v20, %v1407_v11 }
 0x41c   : > { %2116 = vrcp.f32 %v3203_v26  ;;  %v3212_v49 = vpop.permute.xlu0 %1226  ;;  %v1280_v14 = vmul.f32 %v3205_v36, %v3188_v41  ;;  %v1446_v23 = vsub.f32 1.0, %v1445_v5  ;;  %vm3244_vm6 = vmor %vm1314_vm8, %vm1315_vm3  ;;  %v1288_v50 = vand.u32 2147483647, %v3188_v41 }
 0x41d   : > { %v1311_v4 = vsub.f32 1.0, %v1310_v33  ;;  %2118 = vrcp.f32 %v3212_v49  ;;  %vm3781_vm3 = vmmov %vm3780_vm15  ;;  %vm1285_vm2 = vweird.f32 %v3205_v36  ;;  %v1305_v0 = vand.u32 2147483648, %v3212_v49 }
 0x41e   : > { %v1281_v29 = vsub.f32 1.0, %v1280_v14  ;;  %v1447_v46 = vmul.f32 %v3193_v48, %v1446_v23  ;;  %v1413_v23 = vmul.f32 %v1412_v61, %v3143_v59  ;;  %vm3315_vm8 = vmor %vm1449_vm1, %vm1450_vm0  ;;  %vm3348_vm11 = vcmp.eq.f32.partialorder %v1288_v50, 8.507059e+37 }
 0x41f   : > { %v1312_v40 = vmul.f32 %v2113_v6, %v1311_v4  ;;  %vm3330_vm1 = vmor %vm1284_vm10, %vm1285_vm2  ;;  %vm3369_vm10 = vcmp.eq.f32.partialorder %v1348_v13, 8.507059e+37  ;;  %vm1329_vm0 = vweird.f32 %v3203_v26  ;;  %v1335_v34 = vand.u32 2147483648, %v3203_v26 }
 0x420   : > { %v1282_v28 = vmul.f32 %v3205_v36, %v1281_v29  ;;  %v1448_v8 = vadd.f32 %v3193_v48, %v1447_v46  ;;  %v1291_v46 = vor.u32 1.1754944e-38, %v1290_v51 }
 0x421   : > { %v1313_v27 = vadd.f32 %v2113_v6, %v1312_v40  ;;  %v1303_v40 = vand.u32 2147483647, %v3212_v49 }
 0x422   : > { %v3237_v25 = vpop.eup %2116  ;;  %v1512_v38 = vpop.permute.xlu2 %1511  ;;  %v1283_v47 = vadd.f32 %v3205_v36, %v1282_v28  ;;  %v1452_v43 = vsel %vm3315_vm8, %v3193_v48, %v1448_v8  ;;  %v1333_v8 = vand.u32 2147483647, %v3203_v26 }
 0x423   : > { %v3249_v39 = vpop.permute.xlu1 %1256  ;;  %v3251_v42 = vpop.eup %2118  ;;  %v1317_v44 = vsel %vm3244_vm6, %v2113_v6, %v1313_v27  ;;  %v1325_v45 = vmul.f32 %v3237_v25, %v3203_v26  ;;  %vm1536_vm9 = vcmp.eq.s32.totalorder %v1512_v38, 1  ;;  %v1455_v6 = vand.u32 2147483648, %v3185_v7 }
 0x424   : > { %2120 = vrcp.f32 %v3249_v39  ;;  %v3266_v32 = vpop.permute.xlu0 %1251  ;;  %v1322_v60 = vsel %vm1319_vm14, %v1321_v30, %v1317_v44  ;;  %v1295_v9 = vmul.f32 %v3251_v42, %v3212_v49  ;;  %v3277_v33 = vsel %vm1536_vm9, %v1368_v2, %v1476_v10  ;;  %vm3344_vm14 = vmor %vm1344_vm4, %vm1345_vm13 }
 0x425   : > { %v1323_v53 = vmul.f32 %v1322_v60, %v3127_v63  ;;  %1560 = vst.msk [vmem:[#allocation4 + $0x28] sm:$0xff] %vm3780_vm15, %v3277_v33  ;;  %2122 = vrcp.f32 %v3266_v32  ;;  %v1326_v5 = vsub.f32 1.0, %v1325_v45  ;;  %vm1300_vm7 = vweird.f32 %v3251_v42 }
 0x426   : > { %v1296_v58 = vsub.f32 1.0, %v1295_v9  ;;  %v1456_v10 = vor.u32 1.1754944e-38, %v1455_v6  ;;  %vm1299_vm9 = vweird.f32 %v3212_v49  ;;  %v1287_v48 = vsel %vm3330_vm1, %v3205_v36, %v1283_v47  ;;  %v1472_v47 = vld [vmem:[#allocation4 + $0x8] sm:$0xff] }
 0x427   : > { %v3288_v37 = vsel %vm1533_vm12, %v1323_v53, %v1473_v21  ;;  %v1327_v31 = vmul.f32 %v3237_v25, %v1326_v5  ;;  %vm3790_vm12 = vmmov %vm3781_vm3  ;;  %vm1304_vm13 = vcmp.eq.f32.partialorder %v1303_v40, 8.507059e+37  ;;  %v1306_v21 = vor.u32 1.1754944e-38, %v1305_v0  ;;  %v1482_v5 = vld [vmem:[#allocation4 + $0x58] sm:$0xff]  ;;  %v1471_v40 = vld [vmem:[#allocation4] sm:$0xff] }
 0x428   : > { %1557 = vst.msk [vmem:[#allocation4 + $0x10] sm:$0xff] %vm3781_vm3, %v3288_v37  ;;  %v1297_v4 = vmul.f32 %v3251_v42, %v1296_v58  ;;  %vm1301_vm4 = vmor %vm1299_vm9, %vm1300_vm7  ;;  %vm1330_vm15 = vweird.f32 %v3237_v25  ;;  %v1457_v49 = vsel %vm3279_vm5, %v1456_v10, %v1452_v43  ;;  %v1292_v28 = vsel %vm3348_vm11, %v1291_v46, %v1287_v48  ;;  %v1475_v48 = vld [vmem:[#allocation4 + $0x20] sm:$0xff] }
 0x429   : > { %v1328_v9 = vadd.f32 %v3237_v25, %v1327_v31  ;;  %v1351_v58 = vor.u32 1.1754944e-38, %v1350_v17  ;;  %v1347_v13 = vsel %vm3344_vm14, %v3179_v18, %v3225_v15  ;;  %vm3386_vm5 = vmor %vm1329_vm0, %vm1330_vm15  ;;  %v1458_v50 = vmul.f32 %v1457_v49, %v3152_v3  ;;  %v1474_v49 = vld [vmem:[#allocation4 + $0x18] sm:$0xff] }
 0x42a   : > { %v3298_v14 = vpop.eup %2120  ;;  %v1521_v20 = vpop.permute.xlu2 %1520  ;;  %v1298_v16 = vadd.f32 %v3251_v42, %v1297_v4  ;;  %v1293_v15 = vmul.f32 %v1292_v28, %v3129_v52  ;;  %vm3795_vm8 = vmmov %vm3790_vm12  ;;  %vm1334_vm1 = vcmp.eq.f32.partialorder %v1333_v8, 8.507059e+37  ;;  %v1395_v44 = vand.u32 2147483648, %v3249_v39 }
 0x42b   : > { %v1385_v19 = vmul.f32 %v3298_v14, %v3249_v39  ;;  %v3309_v27 = vpop.permute.xlu1 %1271  ;;  %vm1539_vm6 = vcmp.eq.s32.totalorder %v1521_v20, 1  ;;  %v3324_v2 = vpop.eup %2122  ;;  %v1332_v0 = vsel %vm3386_vm5, %v3237_v25, %v1328_v9  ;;  %v1336_v25 = vor.u32 1.1754944e-38, %v1335_v34 }
 0x42c   : > { %2124 = vrcp.f32 %v3309_v27  ;;  %v3322_v30 = vpop.permute.xlu0 %1266  ;;  %v3334_v38 = vsel %vm1539_vm6, %v1413_v23, %v1479_v24  ;;  %v1370_v45 = vmul.f32 %v3324_v2, %v3266_v32  ;;  %v1302_v11 = vsel %vm1301_vm4, %v3251_v42, %v1298_v16  ;;  %vm3796_vm6 = vmmov %vm3795_vm8 }
 0x42d   : > { %2126 = vrcp.f32 %v3322_v30  ;;  %1563 = vst.msk [vmem:[#allocation4 + $0x40] sm:$0xff] %vm3790_vm12, %v3334_v38  ;;  %v1386_v60 = vsub.f32 1.0, %v1385_v19  ;;  %v1307_v6 = vsel %vm1304_vm13, %v1306_v21, %v1302_v11  ;;  %vm3797_vm14 = vmmov %vm3796_vm6  ;;  %v1352_v16 = vsel %vm3369_vm10, %v1351_v58, %v1347_v13 }
 0x42e   : > { %v1371_v57 = vsub.f32 1.0, %v1370_v45  ;;  %v1308_v18 = vmul.f32 %v1307_v6, %v3138_v56  ;;  %vm1390_vm11 = vweird.f32 %v3298_v14  ;;  %v1337_v43 = vsel %vm1334_vm1, %v1336_v25, %v1332_v0  ;;  %vm3802_vm5 = vmmov %vm3796_vm6 }
 0x42f   : > { %v1387_v17 = vmul.f32 %v3298_v14, %v1386_v60  ;;  %vm1375_vm9 = vweird.f32 %v3324_v2  ;;  %vm1389_vm12 = vweird.f32 %v3249_v39  ;;  %v1393_v46 = vand.u32 2147483647, %v3249_v39 }
 0x430   : > { %v1372_v23 = vmul.f32 %v3324_v2, %v1371_v57  ;;  %v1380_v21 = vand.u32 2147483648, %v3266_v32  ;;  %v1353_v60 = vmul.f32 %v1352_v16, %v3125_v35  ;;  %vm3427_vm4 = vmor %vm1389_vm12, %vm1390_vm11  ;;  %vm1374_vm13 = vweird.f32 %v3266_v32 }
 0x431   : > { %v1388_v10 = vadd.f32 %v3298_v14, %v1387_v17  ;;  %v1378_v36 = vand.u32 2147483647, %v3266_v32  ;;  %v1338_v6 = vmul.f32 %v1337_v43, %v3136_v55  ;;  %vm3436_vm10 = vmor %vm1374_vm13, %vm1375_vm9  ;;  %v1396_v32 = vor.u32 1.1754944e-38, %v1395_v44 }
 0x432   : > { %v3375_v53 = vpop.eup %2124  ;;  %v1530_v4 = vpop.permute.xlu2 %1529  ;;  %v1373_v41 = vadd.f32 %v3324_v2, %v1372_v23  ;;  %v1381_v34 = vor.u32 1.1754944e-38, %v1380_v21  ;;  %vm1434_vm1 = vweird.f32 %v3309_v27  ;;  %vm1419_vm11 = vweird.f32 %v3322_v30 }
 0x433   : > { %v3384_v42 = vpop.eup %2126  ;;  %v1500_v51 = vpop.permute.xlu1 %1499  ;;  %vm1542_vm3 = vcmp.eq.s32.totalorder %v1530_v4, 1  ;;  %v1430_v26 = vmul.f32 %v3375_v53, %v3309_v27  ;;  %v1440_v4 = vand.u32 2147483648, %v3309_v27 }
 0x434   : > { %v1497_v24 = vpop.permute.xlu0 %1496  ;;  %v3401_v19 = vsel %vm1542_vm3, %v1458_v50, %v1482_v5  ;;  %vm1532_vm2 = vcmp.eq.s32.totalorder %v1500_v51, 1  ;;  %v1415_v20 = vmul.f32 %v3384_v42, %v3322_v30  ;;  %v1392_v5 = vsel %vm3427_vm4, %v3298_v14, %v1388_v10  ;;  %v1478_v51 = vld [vmem:[#allocation4 + $0x38] sm:$0xff] }
 0x435   : > { %vm1531_vm7 = vcmp.eq.s32.totalorder %v1497_v24, 1  ;;  %1566 = vst.msk [vmem:[#allocation4 + $0x58] sm:$0xff] %vm3795_vm8, %v3401_v19  ;;  %v3408_v29 = vsel %vm1532_vm2, %v1308_v18, %v1472_v47  ;;  %v1431_v7 = vsub.f32 1.0, %v1430_v26  ;;  %v1377_v8 = vsel %vm3436_vm10, %v3324_v2, %v1373_v41  ;;  %vm3803_vm2 = vmmov %vm3802_vm5  ;;  %v1477_v24 = vld [vmem:[#allocation4 + $0x30] sm:$0xff] }
 0x436   : > { %v3410_v31 = vsel %vm1531_vm7, %v1293_v15, %v1471_v40  ;;  %1556 = vst.msk [vmem:[#allocation4 + $0x8] sm:$0xff] %vm3796_vm6, %v3408_v29  ;;  %v1416_v45 = vsub.f32 1.0, %v1415_v20  ;;  %vm1394_vm3 = vcmp.eq.f32.partialorder %v1393_v46, 8.507059e+37  ;;  %vm1379_vm7 = vcmp.eq.f32.partialorder %v1378_v36, 8.507059e+37  ;;  %vm3806_vm13 = vmmov %vm3803_vm2  ;;  %v1481_v41 = vld [vmem:[#allocation4 + $0x50] sm:$0xff] }
 0x437   : > { %1555 = vst.msk [vmem:[#allocation4] sm:$0xff] %vm3797_vm14, %v3410_v31  ;;  %v1432_v58 = vmul.f32 %v3375_v53, %v1431_v7  ;;  %v1397_v17 = vsel %vm1394_vm3, %v1396_v32, %v1392_v5  ;;  %vm1435_vm8 = vweird.f32 %v3375_v53  ;;  %v1382_v50 = vsel %vm1379_vm7, %v1381_v34, %v1377_v8  ;;  %vm3807_vm10 = vmmov %vm3803_vm2 }
 0x438   : > { %v1417_v13 = vmul.f32 %v3384_v42, %v1416_v45  ;;  %vm1420_vm6 = vweird.f32 %v3384_v42  ;;  %v1438_v2 = vand.u32 2147483647, %v3309_v27  ;;  %v1425_v40 = vand.u32 2147483648, %v3322_v30  ;;  %vm3465_vm14 = vmor %vm1434_vm1, %vm1435_vm8 }
 0x439   : > { %v1433_v14 = vadd.f32 %v3375_v53, %v1432_v58  ;;  %v1398_v18 = vmul.f32 %v1397_v17, %v3145_v62  ;;  %v1423_v26 = vand.u32 2147483647, %v3322_v30  ;;  %v1383_v23 = vmul.f32 %v1382_v50, %v3147_v1  ;;  %vm1421_vm12 = vmor %vm1419_vm11, %vm1420_vm6 }
 0x43a   : > { %v1418_v47 = vadd.f32 %v3384_v42, %v1417_v13  ;;  %v1441_v16 = vor.u32 1.1754944e-38, %v1440_v4  ;;  %v1426_v7 = vor.u32 1.1754944e-38, %v1425_v40  ;;  %vm3808_vm7 = vmmov %vm3803_vm2 }
 0x43b   : > { %v1509_v9 = vpop.permute.xlu1 %1508  ;;  %v1437_v25 = vsel %vm3465_vm14, %v3375_v53, %v1433_v14 }
 0x43c   : > { %vm1535_vm15 = vcmp.eq.s32.totalorder %v1509_v9, 1  ;;  %v1506_v28 = vpop.permute.xlu0 %1505  ;;  %v1422_v30 = vsel %vm1421_vm12, %v3384_v42, %v1418_v47 }
 0x43d   : > { %v3441_v57 = vsel %vm1535_vm15, %v1353_v60, %v1475_v48  ;;  %vm1534_vm0 = vcmp.eq.s32.totalorder %v1506_v28, 1  ;;  %vm1439_vm15 = vcmp.eq.f32.partialorder %v1438_v2, 8.507059e+37  ;;  %v1480_v48 = vld [vmem:[#allocation4 + $0x48] sm:$0xff] }
 0x43e   : > { %1559 = vst.msk [vmem:[#allocation4 + $0x20] sm:$0xff] %vm3802_vm5, %v3441_v57  ;;  %v3449_v61 = vsel %vm1534_vm0, %v1338_v6, %v1474_v49  ;;  %vm1424_vm0 = vcmp.eq.f32.partialorder %v1423_v26, 8.507059e+37  ;;  %v1442_v43 = vsel %vm1439_vm15, %v1441_v16, %v1437_v25 }
 0x43f   : > { %1558 = vst.msk [vmem:[#allocation4 + $0x18] sm:$0xff] %vm3803_vm2, %v3449_v61  ;;  %v1427_v44 = vsel %vm1424_vm0, %v1426_v7, %v1422_v30  ;;  %v1443_v45 = vmul.f32 %v1442_v43, %v3154_v22 }
 0x440   : > { %v1428_v46 = vmul.f32 %v1427_v44, %v3156_v12 }
 0x443   : > { %v1518_v15 = vpop.permute.xlu1 %1517 }
 0x444   : > { %vm1538_vm9 = vcmp.eq.s32.totalorder %v1518_v15, 1  ;;  %v1515_v20 = vpop.permute.xlu0 %1514 }
 0x445   : > { %v3472_v27 = vsel %vm1538_vm9, %v1398_v18, %v1478_v51  ;;  %vm1537_vm4 = vcmp.eq.s32.totalorder %v1515_v20, 1 }
 0x446   : > { %1562 = vst.msk [vmem:[#allocation4 + $0x38] sm:$0xff] %vm3806_vm13, %v3472_v27  ;;  %v3479_v10 = vsel %vm1537_vm4, %v1383_v23, %v1477_v24 }
 0x447   : > { %1561 = vst.msk [vmem:[#allocation4 + $0x30] sm:$0xff] %vm3807_vm10, %v3479_v10 }
 0x44b   : > { %v1527_v53 = vpop.permute.xlu1 %1526  ;;  %1570 = sbr.rel (%p1939_p0) target bundleno = 1248 (0x4e0), region = 64 }
 0x44c   : > { %vm1541_vm5 = vcmp.eq.s32.totalorder %v1527_v53, 1  ;;  %v1524_v21 = vpop.permute.xlu0 %1523 }
 0x44d   : > { %v3486_v60 = vsel %vm1541_vm5, %v1443_v45, %v1481_v41  ;;  %vm1540_vm3 = vcmp.eq.s32.totalorder %v1524_v21, 1 }
 0x44e   : > { %1565 = vst.msk [vmem:[#allocation4 + $0x50] sm:$0xff] %vm3803_vm2, %v3486_v60  ;;  %v3490_v42 = vsel %vm1540_vm3, %v1428_v46, %v1480_v48 }
 0x44f   : > { %1564 = vst.msk [vmem:[#allocation4 + $0x48] sm:$0xff] %vm3808_vm7, %v3490_v42 }
 0x450   : > { %vm1627_vm8 = vcmp.gt.f32.partialorder %v3125_v35, %v3129_v52  ;;  %vm1628_vm6 = vcmp.gt.f32.partialorder %v3134_v54, %v3138_v56  ;;  %v2349_v9 = vmov 6   ;;  %vm1631_vm1 = vcmp.ge.f32.partialorder %v3125_v35, %v3143_v59 }
 0x451   : > { %2139 = vset.pattern.permute.xlu1 %v2349_v9  ;;  %2128 = vset.pattern.permute.xlu0 %v2349_v9  ;;  %vm1632_vm14 = vcmp.ge.f32.partialorder %v3134_v54, %v3156_v12  ;;  %vm1575_vm11 = vcmp.ge.f32.partialorder %v3129_v52, %v3125_v35  ;;  %vm1635_vm9 = vmand %vm1627_vm8, %vm1631_vm1  ;;  %vm1576_vm12 = vcmp.ge.f32.partialorder %v3138_v56, %v3134_v54  ;;  %v2350_v49 = vmov 0.0  }
 0x452   : > { %vm1579_vm4 = vcmp.ge.f32.partialorder %v3129_v52, %v3143_v59  ;;  %vm1580_vm13 = vcmp.ge.f32.partialorder %v3138_v56, %v3156_v12  ;;  %2150 = vset.pattern.permute.xlu2 %v2349_v9  ;;  %vm1636_vm15 = vmand %vm1628_vm6, %vm1632_vm14  ;;  %v1944_v11 = vsel %vm1635_vm9, 1.0, %v2350_v49  ;;  %vm1629_vm10 = vcmp.gt.f32.partialorder %v3147_v1, %v3127_v63 }
 0x453   : > { %vm1633_vm0 = vcmp.ge.f32.partialorder %v3147_v1, %v3154_v22  ;;  %v1945_v36 = vsel %vm1636_vm15, 1.0, %v2350_v49  ;;  %vm1583_vm5 = vmand %vm1575_vm11, %vm1579_vm4  ;;  %vm1630_vm3 = vcmp.gt.f32.partialorder %v3145_v62, %v3136_v55  ;;  %vm1634_vm2 = vcmp.ge.f32.partialorder %v3145_v62, %v3152_v3 }
 0x454   : > { %vm1577_vm7 = vcmp.ge.f32.partialorder %v3127_v63, %v3147_v1  ;;  %v2140_v6 = vpack.i.bf16 %v1945_v36, %v1944_v11  ;;  %vm1584_vm8 = vmand %vm1576_vm12, %vm1580_vm13  ;;  %v1940_v28 = vsel %vm1583_vm5, 1.0, %v2350_v49  ;;  %vm1581_vm6 = vcmp.ge.f32.partialorder %v3127_v63, %v3154_v22 }
 0x455   : > { %v1625_v39 = vadd.f32 %v3147_v1, %v3127_v63  ;;  %v1941_v58 = vsel %vm1584_vm8, 1.0, %v2350_v49  ;;  %vm1637_vm1 = vmand %vm1629_vm10, %vm1633_vm0  ;;  %vm1578_vm14 = vcmp.ge.f32.partialorder %v3136_v55, %v3145_v62  ;;  %vm1582_vm11 = vcmp.ge.f32.partialorder %v3136_v55, %v3152_v3 }
 0x456   : > { %v1626_v5 = vadd.f32 %v3145_v62, %v3136_v55  ;;  %2141 = vperm.xlu1 %2139, %v2140_v6   ;;  %v2129_v32 = vpack.i.bf16 %v1941_v58, %v1940_v28  ;;  %vm1638_vm9 = vmand %vm1630_vm3, %vm1634_vm2  ;;  %v1623_v13 = vadd.f32 %v3125_v35, %v3129_v52  ;;  %v1624_v8 = vadd.f32 %v3134_v54, %v3138_v56 }
 0x457   : > { %v1946_v34 = vsel %vm1637_vm1, 1.0, %v2350_v49  ;;  %v1947_v17 = vsel %vm1638_vm9, 1.0, %v2350_v49  ;;  %vm1585_vm12 = vmand %vm1577_vm7, %vm1581_vm6  ;;  %v1677_v14 = vadd.f32 %v1625_v39, %v3154_v22  ;;  %vm1679_vm13 = vcmp.gt.f32.partialorder %v3143_v59, %v3129_v52 }
 0x458   : > { %v1678_v50 = vadd.f32 %v1626_v5, %v3152_v3  ;;  %2130 = vperm.xlu0 %2128, %v2129_v32   ;;  %vm1586_vm4 = vmand %vm1578_vm14, %vm1582_vm11  ;;  %v1942_v4 = vsel %vm1585_vm12, 1.0, %v2350_v49  ;;  %v2145_v51 = vpack.i.bf16 %v1947_v17, %v1946_v34  ;;  %v1675_v2 = vadd.f32 %v1623_v13, %v3143_v59 }
 0x459   : > { %v1943_v47 = vsel %vm1586_vm4, 1.0, %v2350_v49  ;;  %v1676_v40 = vadd.f32 %v1624_v8, %v3156_v12  ;;  %vm1680_vm15 = vcmp.gt.f32.partialorder %v3156_v12, %v3138_v56  ;;  %vm1729_vm10 = vcmp.gt.f32.partialorder %v1677_v14, 0.0 }
 0x45a   : > { %vm1730_vm0 = vcmp.gt.f32.partialorder %v1678_v50, 0.0  ;;  %vm1683_vm5 = vcmp.gt.f32.partialorder %v3143_v59, %v3125_v35  ;;  %vm1684_vm3 = vcmp.gt.f32.partialorder %v3156_v12, %v3134_v54  ;;  %v2134_v18 = vpack.i.bf16 %v1943_v47, %v1942_v4 }
 0x45b   : > { %vm1687_vm2 = vmand %vm1679_vm13, %vm1683_vm5  ;;  %vm1681_vm7 = vcmp.gt.f32.partialorder %v3154_v22, %v3127_v63  ;;  %vm1682_vm8 = vcmp.gt.f32.partialorder %v3152_v3, %v3136_v55  ;;  %vm1685_vm6 = vcmp.gt.f32.partialorder %v3154_v22, %v3147_v1  ;;  %vm1686_vm14 = vcmp.gt.f32.partialorder %v3152_v3, %v3145_v62 }
 0x45c   : > { %vm1688_vm1 = vmand %vm1680_vm15, %vm1684_vm3  ;;  %v1948_v52 = vsel %vm1687_vm2, 1.0, %v2350_v49  ;;  %vm1727_vm11 = vcmp.gt.f32.partialorder %v1675_v2, 0.0  ;;  %vm1728_vm9 = vcmp.gt.f32.partialorder %v1676_v40, 0.0  ;;  %v1954_v63 = vsel %vm1729_vm10, 1.0, %v2350_v49 }
 0x45d   : > { %v1949_v35 = vsel %vm1688_vm1, 1.0, %v2350_v49  ;;  %vm1689_vm12 = vmand %vm1681_vm7, %vm1685_vm6  ;;  %v1955_v54 = vsel %vm1730_vm0, 1.0, %v2350_v49  ;;  %v1952_v56 = vsel %vm1727_vm11, 1.0, %v2350_v49  ;;  %v1953_v59 = vsel %vm1728_vm9, 1.0, %v2350_v49 }
 0x45e   : > { %2146 = vperm.xlu1 %2139, %v2145_v51   ;;  %v2151_v55 = vpack.i.bf16 %v1949_v35, %v1948_v52  ;;  %vm1690_vm4 = vmand %vm1682_vm8, %vm1686_vm14  ;;  %v2166_v62 = vpack.i.bf16 %v1955_v54, %v1954_v63  ;;  %v1950_v1 = vsel %vm1689_vm12, 1.0, %v2350_v49  ;;  %v2161_v22 = vpack.i.bf16 %v1953_v59, %v1952_v56 }
 0x45f   : > { %v1951_v3 = vsel %vm1690_vm4, 1.0, %v2350_v49  ;;  %v1739_v43 = vlaneseq  ;;  %vm3810_vm15 = vcmask 64512  }
 0x460   : > { %2135 = vperm.xlu0 %2128, %v2134_v18   ;;  %2152 = vperm.xlu2 %2150, %v2151_v55   ;;  %v2156_v12 = vpack.i.bf16 %v1951_v3, %v1950_v1  ;;  %vm3811_vm10 = vmmov %vm3810_vm15 }
 0x461   : > { %v1740_v39 = vand.u32 127, %v1739_v43  ;;  %vm3812_vm0 = vmmov %vm3811_vm10 }
 0x462   : > { %vm3813_vm5 = vmmov %vm3812_vm0 }
 0x463   : > { %vm1741_vm13 = vcmp.eq.s32.totalorder %v1740_v39, 7 }
 0x466   : > { %2167 = vperm.xlu1 %2139, %v2166_v62  }
 0x468   : > { %2162 = vperm.xlu0 %2128, %v2161_v22   ;;  %2157 = vperm.xlu2 %2150, %v2156_v12  }
 0x4ba   : > { %v2153_v24 = vpop.permute.xlu2 %2152 }
 0x4bb   : > { %v2155_v30 = vunpack.i.h.bf16 %v2153_v24  ;;  %v2154_v44 = vunpack.i.l.bf16 %v2153_v24 }
 0x4bd   : > { %v1720_v36 = vmul.f32 %v2155_v30, %v3490_v42 }
 0x4c2   : > { %v2158_v9 = vpop.permute.xlu2 %2157 }
 0x4c8   : > { %v2142_v15 = vpop.permute.xlu1 %2141 }
 0x4c9   : > { %v2144_v26 = vunpack.i.h.bf16 %v2142_v15  ;;  %v2143_v20 = vunpack.i.l.bf16 %v2142_v15 }
 0x4ca   : > { %v2131_v0 = vpop.permute.xlu0 %2130 }
 0x4cb   : > { %v2133_v23 = vunpack.i.h.bf16 %v2131_v0  ;;  %v2132_v25 = vunpack.i.l.bf16 %v2131_v0  ;;  %v1668_v41 = vmul.f32 %v2144_v26, %v3277_v33  ;;  %v1667_v46 = vmul.f32 %v2143_v20, %v3441_v57 }
 0x4cc   : > { %v2159_v33 = vunpack.i.l.bf16 %v2158_v9  ;;  %v1719_v57 = vmul.f32 %v2154_v44, %v3334_v38 }
 0x4cd   : > { %v1616_v45 = vmul.f32 %v2133_v23, %v3408_v29  ;;  %v1615_v21 = vmul.f32 %v2132_v25, %v3410_v31  ;;  %v2160_v31 = vunpack.i.h.bf16 %v2158_v9 }
 0x4ce   : > { %v1721_v42 = vmul.f32 %v2159_v33, %v3486_v60 }
 0x4cf   : > { %v1672_v58 = vadd.f32 %v1668_v41, %v1616_v45  ;;  %v1671_v32 = vadd.f32 %v1667_v46, %v1615_v21  ;;  %v1722_v38 = vmul.f32 %v2160_v31, %v3401_v19 }
 0x4d0   : > { %v2147_v16 = vpop.permute.xlu1 %2146 }
 0x4d1   : > { %v2148_v7 = vunpack.i.l.bf16 %v2147_v16  ;;  %v2149_v53 = vunpack.i.h.bf16 %v2147_v16  ;;  %v1724_v34 = vadd.f32 %v1720_v36, %v1672_v58  ;;  %v1723_v17 = vadd.f32 %v1719_v57, %v1671_v32 }
 0x4d2   : > { %v2136_v48 = vpop.permute.xlu0 %2135 }
 0x4d3   : > { %v2138_v49 = vunpack.i.h.bf16 %v2136_v48  ;;  %v2137_v11 = vunpack.i.l.bf16 %v2136_v48  ;;  %v1669_v6 = vmul.f32 %v2148_v7, %v3479_v10  ;;  %v1670_v29 = vmul.f32 %v2149_v53, %v3472_v27 }
 0x4d5   : > { %v1617_v28 = vmul.f32 %v2137_v11, %v3288_v37  ;;  %v1618_v5 = vmul.f32 %v2138_v49, %v3449_v61 }
 0x4d7   : > { %v1673_v8 = vadd.f32 %v1669_v6, %v1617_v28  ;;  %v1674_v10 = vadd.f32 %v1670_v29, %v1618_v5 }
 0x4d8   : > { %v2168_v13 = vpop.permute.xlu1 %2167 }
 0x4d9   : > { %v2169_v27 = vunpack.i.l.bf16 %v2168_v13  ;;  %v2170_v50 = vunpack.i.h.bf16 %v2168_v13  ;;  %v1725_v4 = vadd.f32 %v1721_v42, %v1673_v8  ;;  %v1726_v2 = vadd.f32 %v1722_v38, %v1674_v10 }
 0x4da   : > { %v2163_v37 = vpop.permute.xlu0 %2162 }
 0x4db   : > { %v2165_v14 = vunpack.i.h.bf16 %v2163_v37  ;;  %v2164_v61 = vunpack.i.l.bf16 %v2163_v37  ;;  %v1764_v60 = vsel %vm1741_vm13, %v2169_v27, %v1725_v4  ;;  %v1765_v40 = vsel %vm1741_vm13, %v2170_v50, %v1726_v2 }
 0x4dc   : > { %1768 = vst.msk [vmem:[%s2539_s30 + $0x10] sm:$0xff] %vm3812_vm0, %v1764_v60 }
 0x4dd   : > { %v1762_v47 = vsel %vm1741_vm13, %v2164_v61, %v1723_v17  ;;  %v1763_v51 = vsel %vm1741_vm13, %v2165_v14, %v1724_v34  ;;  %1769 = vst.msk [vmem:[%s2539_s30 + $0x18] sm:$0xff] %vm3813_vm5, %v1765_v40 }
 0x4de   : > { %1766 = vst.msk [vmem:[%s2539_s30] sm:$0xff] %vm3810_vm15, %v1762_v47 }
 0x4df   : > { %1767 = vst.msk [vmem:[%s2539_s30 + $0x8] sm:$0xff] %vm3811_vm10, %v1763_v51 }
 0x4e0 PF: > { %s18_s21 = sadd.s32 1, %s2341_s21   ;;  %s3815_s0 = sld [smem:[#allocation12_spill]] }
 0x4e1   : > { %p3603_p1 = scmp.ge.s32.totalorder %s18_s21, 42   ;;  %s3816_s14 = sld [smem:[#allocation17_spill]] }
 0x4e2   : > { %s3817_s16 = sld [smem:[#allocation15_spill]]  ;;  %s3821_s9 = smov %s2297_s10 }
 0x4e3   : > { %s3818_s23 = sld [smem:[#allocation16_spill]]  ;;  %s3822_s10 = smov %s2301_s11 }
 0x4e4   : > { %s3819_s19 = sld [smem:[#allocation18_spill]]  ;;  %s3823_s11 = smov %s2514_s28 }
 0x4e5   : > { %s3820_s24 = sld [smem:[#allocation19_spill]]  ;;  %s3824_s12 = smov %s2309_s13 }
 0x4e6   : > { %s3825_s13 = smov %s3815_s0  ;;  %s3826_s15 = smov %s2329_s18 }
 0x4e7   : > { %s3827_s17 = smov %s2337_s20  ;;  %17 = sbr.rel (!%p3603_p1) target bundleno = 12 (0xc), region = 109 }
 0x4e9   : > { %s3828_s18 = smov %s3818_s23 }
 0x4eb   : > { %s3829_s20 = smov %s3820_s24 }
 0x4ec   :  { %1792 = vsyncpa [#allocation7], 1 }
 0x4ed   :  { %1794 = vsyncpa [#allocation7 + $0x1], 1 }
 0x4ee   :  { %1795 = vsyncpa [#allocation9], 1 }
 0x4ef   :  { %1797 = vsyncpa [#allocation9 + $0x1], 1 }

</bundles_post_ra>
